<compile_context>
chip_gen: v7x
topology: tpu7x:2x2x1
jax: 0.10.0
libtpu: 0.0.40
codegen_flags: <defaults>
</compile_context>

<pallas_src>
import numpy as np
import jax
import jax.numpy as jnp
from jax import lax
from jax.experimental import pallas as pl
from jax.experimental.pallas import tpu as pltpu


def _round_up(v, m):
    return (v + m - 1) // m * m


# ---------------------------------------------------------------------------
# Kernel
# ---------------------------------------------------------------------------
def _gru_kernel(x_ref, wih_ref, whh_ref, bih_ref, bhh_ref, wfc_ref, bfc_ref,
                o_ref):
    """One batch tile: run the full T-step GRU recurrence + classifier head.

    x_ref   : (T, TILE_B, IN)   bf16
    wih_ref : (IN, 3*HP)        bf16   (gate order [r | z | n], lane-padded)
    whh_ref : (HP, 3*HP)        bf16
    bih_ref : (1, 3*HP)         f32
    bhh_ref : (1, 3*HP)         f32
    wfc_ref : (HP, CP)          bf16
    bfc_ref : (1, CP)           f32
    o_ref   : (TILE_B, CP)      f32
    """
    T = x_ref.shape[0]
    tile_b = x_ref.shape[1]
    hp = wih_ref.shape[1] // 3

    # Hoist weight/bias loads out of the recurrence loop.
    wih = wih_ref[...]
    whh = whh_ref[...]
    bih = bih_ref[...]
    bhh_r = bhh_ref[:, 0:hp]
    bhh_z = bhh_ref[:, hp:2 * hp]
    bhh_n = bhh_ref[:, 2 * hp:3 * hp]

    h0 = jnp.zeros((tile_b, hp), jnp.float32)

    def step(t, h):
        x_t = x_ref[t]                                           # (TILE_B, IN) bf16
        # MXU matmuls in bf16, f32 accumulation.
        gx = jnp.dot(x_t, wih, preferred_element_type=jnp.float32) + bih
        gh = jnp.dot(h.astype(jnp.bfloat16), whh,
                     preferred_element_type=jnp.float32)
        # Gate math on the VPU/EUP in f32.
        r = jax.nn.sigmoid(gx[:, 0:hp] + gh[:, 0:hp] + bhh_r)
        z = jax.nn.sigmoid(gx[:, hp:2 * hp] + gh[:, hp:2 * hp] + bhh_z)
        n = jnp.tanh(gx[:, 2 * hp:3 * hp] + r * (gh[:, 2 * hp:3 * hp] + bhh_n))
        return (1.0 - z) * n + z * h

    h = lax.fori_loop(0, T, step, h0, unroll=True)

    # dropout(p=0.2) -> identity at inference.

    # Classifier head; CP is lane-padded to 128 so the store is lane-dense.
    logits = jnp.dot(h.astype(jnp.bfloat16), wfc_ref[...],
                     preferred_element_type=jnp.float32) + bfc_ref[...]
    o_ref[...] = logits.astype(o_ref.dtype)


# ---------------------------------------------------------------------------
# Wrapper
# ---------------------------------------------------------------------------
def _pack_gate_matrix(w, H, HP):
    """(3H, K) PyTorch gate-stacked weight -> (K, 3*HP) transposed + lane-padded."""
    K = w.shape[1]
    w3 = w.reshape(3, H, K)
    w3p = jnp.zeros((3, HP, K), w.dtype).at[:, :H, :].set(w3)
    return jnp.transpose(w3p, (2, 0, 1)).reshape(K, 3 * HP)


def _pack_gate_bias(b, H, HP):
    b3 = b.reshape(3, H)
    b3p = jnp.zeros((3, HP), jnp.float32).at[:, :H].set(b3.astype(jnp.float32))
    return b3p.reshape(1, 3 * HP)


def gru_classification_forward(x, params, *, tile_b=512):
    """Run the fused GRU + classifier Pallas kernel.

    x       : (B, T, input_size) float32 (batch_first, like the PyTorch module)
    params  : dict with PyTorch-convention weights:
              w_ih (3H, in), w_hh (3H, H), b_ih (3H,), b_hh (3H,),
              w_fc (C, H),   b_fc (C,)
    returns : (B, num_classes) float32 logits
    """
    B, T, IN = x.shape
    H = params["w_hh"].shape[1]
    C = params["w_fc"].shape[0]
    HP = _round_up(H, 128)     # per-gate lane-padded hidden width
    CP = _round_up(C, 128)     # lane-padded num_classes (lane-dense output)

    # Batch tile: multiple of 16 (bf16 sublane packing), capped by batch size.
    tile_b = _round_up(min(tile_b, _round_up(B, 16)), 16)
    B_pad = _round_up(B, tile_b)
    nb = B_pad // tile_b

    # --- one-time weight preparation (glue in plain JAX) -------------------
    wih_p = _pack_gate_matrix(params["w_ih"], H, HP).astype(jnp.bfloat16)  # (IN, 3HP)
    whh_small = _pack_gate_matrix(params["w_hh"], H, HP)                   # (H, 3HP)
    whh_p = jnp.zeros((HP, 3 * HP), whh_small.dtype).at[:H, :].set(whh_small)
    whh_p = whh_p.astype(jnp.bfloat16)                                     # (HP, 3HP)
    bih_p = _pack_gate_bias(params["b_ih"], H, HP)                         # (1, 3HP) f32
    bhh_p = _pack_gate_bias(params["b_hh"], H, HP)                         # (1, 3HP) f32
    wfc_p = jnp.zeros((HP, CP), jnp.float32).at[:H, :C].set(
        params["w_fc"].T.astype(jnp.float32)).astype(jnp.bfloat16)         # (HP, CP)
    bfc_p = jnp.zeros((1, CP), jnp.float32).at[0, :C].set(
        params["b_fc"].astype(jnp.float32))                                # (1, CP)

    # x: bf16, time-major, batch-padded.
    xt = jnp.transpose(x.astype(jnp.bfloat16), (1, 0, 2))                  # (T, B, IN)
    if B_pad > B:
        xt = jnp.pad(xt, ((0, 0), (0, B_pad - B), (0, 0)))

    # --- cost estimate (advisory) ------------------------------------------
    flops = 2 * B_pad * T * (IN * 3 * HP + HP * 3 * HP) + 2 * B_pad * HP * CP
    transcendentals = B_pad * T * 3 * HP
    bytes_accessed = (T * B_pad * IN * 2 + B_pad * CP * 4
                      + (IN * 3 * HP + HP * 3 * HP + HP * CP) * 2
                      + (2 * 3 * HP + CP) * 4)

    weight_spec = lambda a: pl.BlockSpec(a.shape, lambda b: (0,) * a.ndim)

    out = pl.pallas_call(
        _gru_kernel,
        out_shape=jax.ShapeDtypeStruct((B_pad, CP), jnp.float32),
        grid=(nb,),
        in_specs=[
            pl.BlockSpec((T, tile_b, IN), lambda b: (0, b, 0)),   # x: batch-tiled
            weight_spec(wih_p),                                   # weights stay resident
            weight_spec(whh_p),
            weight_spec(bih_p),
            weight_spec(bhh_p),
            weight_spec(wfc_p),
            weight_spec(bfc_p),
        ],
        out_specs=pl.BlockSpec((tile_b, CP), lambda b: (b, 0)),
        compiler_params=pltpu.CompilerParams(
            dimension_semantics=("parallel",),
            vmem_limit_bytes=32 * 1024 * 1024,
        ),
        cost_estimate=pl.CostEstimate(
            flops=flops,
            transcendentals=transcendentals,
            bytes_accessed=bytes_accessed,
        ),
    )(xt, wih_p, whh_p, bih_p, bhh_p, wfc_p, bfc_p)

    return out[:B, :C]


# ---------------------------------------------------------------------------
# Parameter init (PyTorch-style uniform(-1/sqrt(H), 1/sqrt(H)))
# ---------------------------------------------------------------------------
def init_params(key, input_size, hidden_size=32, num_classes=2):
    ks = jax.random.split(key, 6)
    bound = 1.0 / np.sqrt(hidden_size)

    def u(k, shape):
        return jax.random.uniform(k, shape, jnp.float32, -bound, bound)

    return {
        "w_ih": u(ks[0], (3 * hidden_size, input_size)),
        "w_hh": u(ks[1], (3 * hidden_size, hidden_size)),
        "b_ih": u(ks[2], (3 * hidden_size,)),
        "b_hh": u(ks[3], (3 * hidden_size,)),
        "w_fc": u(ks[4], (num_classes, hidden_size)),
        "b_fc": u(ks[5], (num_classes,)),
    }


# ---------------------------------------------------------------------------
# Pure-JAX reference (f32) for correctness checking
# ---------------------------------------------------------------------------
def _reference_forward(x, p):
    B, T, IN = x.shape
    H = p["w_hh"].shape[1]
    w_ih, w_hh = p["w_ih"], p["w_hh"]
    b_ih, b_hh = p["b_ih"], p["b_hh"]

    def step(h, x_t):
        gx = x_t @ w_ih.T + b_ih
        gh = h @ w_hh.T + b_hh
        r = jax.nn.sigmoid(gx[:, :H] + gh[:, :H])
        z = jax.nn.sigmoid(gx[:, H:2 * H] + gh[:, H:2 * H])
        n = jnp.tanh(gx[:, 2 * H:] + r * gh[:, 2 * H:])
        return (1.0 - z) * n + z * h, None

    h0 = jnp.zeros((B, H), jnp.float32)
    hT, _ = lax.scan(step, h0, jnp.transpose(x, (1, 0, 2)))
    return hT @ p["w_fc"].T + p["b_fc"]


if __name__ == "__main__":
    key = jax.random.PRNGKey(0)
    k_x, k_p = jax.random.split(key)

    batch = 24
    seq_len = 8
    input_size = 16
    hidden_size = 32
    num_classes = 2

    x = jax.random.normal(k_x, (batch, seq_len, input_size), jnp.float32)
    params = init_params(k_p, input_size, hidden_size, num_classes)

    # tile_b=16 exercises multiple batch tiles + batch padding at this size.
    out = gru_classification_forward(x, params, tile_b=16)
    out = jax.block_until_ready(out)

    ref = _reference_forward(x, params)
    assert out.shape == (batch, num_classes)
    # bf16 MXU operands -> relaxed tolerance vs f32 reference.
    assert jnp.allclose(out, ref, atol=3e-2, rtol=3e-2), "mismatch vs JAX reference"

    print("KERNEL_OK")
</pallas_src>

<mosaic_0001>
module attributes {stable_mosaic.version = 11 : i64} {
  func.func @_gru_kernel(%arg0: i32, %arg1: memref<8x16x16xbf16, #tpu.memory_space<vmem>>, %arg2: memref<16x384xbf16, #tpu.memory_space<vmem>>, %arg3: memref<128x384xbf16, #tpu.memory_space<vmem>>, %arg4: memref<1x384xf32, #tpu.memory_space<vmem>>, %arg5: memref<1x384xf32, #tpu.memory_space<vmem>>, %arg6: memref<128x128xbf16, #tpu.memory_space<vmem>>, %arg7: memref<1x128xf32, #tpu.memory_space<vmem>>, %arg8: memref<16x128xf32, #tpu.memory_space<vmem>>) attributes {dimension_semantics = [#tpu.dimension_semantics<parallel>], iteration_bounds = array<i64: 2>, scalar_prefetch = 0 : i64, scratch_operands = 0 : i64, tpu.core_type = #tpu.core_type<tc>, window_params = [{transform_indices = @transform_0, window_bounds = array<i64: 8, 16, 16>}, {pipeline_mode = #tpu.pipeline_mode<synchronous>, transform_indices = @transform_1, window_bounds = array<i64: 16, 384>}, {pipeline_mode = #tpu.pipeline_mode<synchronous>, transform_indices = @transform_2, window_bounds = array<i64: 128, 384>}, {pipeline_mode = #tpu.pipeline_mode<synchronous>, transform_indices = @transform_3, window_bounds = array<i64: 1, 384>}, {pipeline_mode = #tpu.pipeline_mode<synchronous>, transform_indices = @transform_4, window_bounds = array<i64: 1, 384>}, {pipeline_mode = #tpu.pipeline_mode<synchronous>, transform_indices = @transform_5, window_bounds = array<i64: 128, 128>}, {pipeline_mode = #tpu.pipeline_mode<synchronous>, transform_indices = @transform_6, window_bounds = array<i64: 1, 128>}, {transform_indices = @transform_7, window_bounds = array<i64: 16, 128>}]} {
    %c0 = arith.constant 0 : index
    %c0_0 = arith.constant 0 : index
    %0 = vector.load %arg2[%c0, %c0_0] : memref<16x384xbf16, #tpu.memory_space<vmem>>, vector<16x384xbf16>
    %c0_1 = arith.constant 0 : index
    %c0_2 = arith.constant 0 : index
    %1 = vector.load %arg3[%c0_1, %c0_2] : memref<128x384xbf16, #tpu.memory_space<vmem>>, vector<128x384xbf16>
    %c0_3 = arith.constant 0 : index
    %c0_4 = arith.constant 0 : index
    %2 = vector.load %arg4[%c0_3, %c0_4] : memref<1x384xf32, #tpu.memory_space<vmem>>, vector<1x384xf32>
    %c0_5 = arith.constant 0 : index
    %c0_6 = arith.constant 0 : index
    %3 = vector.load %arg5[%c0_5, %c0_6] : memref<1x384xf32, #tpu.memory_space<vmem>>, vector<1x128xf32>
    %c0_7 = arith.constant 0 : index
    %c128 = arith.constant 128 : index
    %4 = vector.load %arg5[%c0_7, %c128] : memref<1x384xf32, #tpu.memory_space<vmem>>, vector<1x128xf32>
    %c0_8 = arith.constant 0 : index
    %c256 = arith.constant 256 : index
    %5 = vector.load %arg5[%c0_8, %c256] : memref<1x384xf32, #tpu.memory_space<vmem>>, vector<1x128xf32>
    %cst = arith.constant 0.000000e+00 : f32
    %6 = vector.broadcast %cst : f32 to vector<16x128xf32>
    %c0_i32 = arith.constant 0 : i32
    %7 = arith.index_cast %c0_i32 : i32 to index
    %c0_9 = arith.constant 0 : index
    %c0_10 = arith.constant 0 : index
    %8 = vector.load %arg1[%7, %c0_9, %c0_10] : memref<8x16x16xbf16, #tpu.memory_space<vmem>>, vector<1x16x16xbf16>
    %9 = vector.shape_cast %8 : vector<1x16x16xbf16> to vector<16x16xbf16>
    %cst_11 = arith.constant dense<0.000000e+00> : vector<16x384xf32>
    %10 = tpu.matmul %9, %0, %cst_11 {dimension_numbers = #tpu.dot_dimension_numbers<[1], [0], [0], [1], [0, 0, 1, 1], [], []>} : vector<16x16xbf16>, vector<16x384xbf16>, vector<16x384xf32> -> vector<16x384xf32>
    %11 = vector.broadcast %2 : vector<1x384xf32> to vector<16x384xf32>
    %12 = arith.addf %10, %11 : vector<16x384xf32>
    %13 = arith.truncf %6 : vector<16x128xf32> to vector<16x128xbf16>
    %cst_12 = arith.constant dense<0.000000e+00> : vector<16x384xf32>
    %14 = tpu.matmul %13, %1, %cst_12 {dimension_numbers = #tpu.dot_dimension_numbers<[1], [0], [0], [1], [0, 0, 1, 1], [], []>} : vector<16x128xbf16>, vector<128x384xbf16>, vector<16x384xf32> -> vector<16x384xf32>
    %15 = vector.extract_strided_slice %12 {offsets = [0, 0], sizes = [16, 128], strides = [1, 1]} : vector<16x384xf32> to vector<16x128xf32>
    %16 = vector.extract_strided_slice %14 {offsets = [0, 0], sizes = [16, 128], strides = [1, 1]} : vector<16x384xf32> to vector<16x128xf32>
    %17 = arith.addf %15, %16 : vector<16x128xf32>
    %18 = vector.broadcast %3 : vector<1x128xf32> to vector<16x128xf32>
    %19 = arith.addf %17, %18 : vector<16x128xf32>
    %20 = arith.negf %19 : vector<16x128xf32>
    %21 = math.exp %20 : vector<16x128xf32>
    %cst_13 = arith.constant 1.000000e+00 : f32
    %22 = vector.broadcast %cst_13 : f32 to vector<16x128xf32>
    %23 = arith.addf %22, %21 : vector<16x128xf32>
    %24 = arith.divf %22, %23 : vector<16x128xf32>
    %25 = vector.extract_strided_slice %12 {offsets = [0, 128], sizes = [16, 128], strides = [1, 1]} : vector<16x384xf32> to vector<16x128xf32>
    %26 = vector.extract_strided_slice %14 {offsets = [0, 128], sizes = [16, 128], strides = [1, 1]} : vector<16x384xf32> to vector<16x128xf32>
    %27 = arith.addf %25, %26 : vector<16x128xf32>
    %28 = vector.broadcast %4 : vector<1x128xf32> to vector<16x128xf32>
    %29 = arith.addf %27, %28 : vector<16x128xf32>
    %30 = arith.negf %29 : vector<16x128xf32>
    %31 = math.exp %30 : vector<16x128xf32>
    %cst_14 = arith.constant 1.000000e+00 : f32
    %32 = vector.broadcast %cst_14 : f32 to vector<16x128xf32>
    %33 = arith.addf %32, %31 : vector<16x128xf32>
    %34 = arith.divf %32, %33 : vector<16x128xf32>
    %35 = vector.extract_strided_slice %12 {offsets = [0, 256], sizes = [16, 128], strides = [1, 1]} : vector<16x384xf32> to vector<16x128xf32>
    %36 = vector.extract_strided_slice %14 {offsets = [0, 256], sizes = [16, 128], strides = [1, 1]} : vector<16x384xf32> to vector<16x128xf32>
    %37 = vector.broadcast %5 : vector<1x128xf32> to vector<16x128xf32>
    %38 = arith.addf %36, %37 : vector<16x128xf32>
    %39 = arith.mulf %24, %38 : vector<16x128xf32>
    %40 = arith.addf %35, %39 : vector<16x128xf32>
    %41 = math.tanh %40 : vector<16x128xf32>
    %cst_15 = arith.constant 1.000000e+00 : f32
    %42 = vector.broadcast %cst_15 : f32 to vector<16x128xf32>
    %43 = arith.subf %42, %34 : vector<16x128xf32>
    %44 = arith.mulf %43, %41 : vector<16x128xf32>
    %45 = arith.mulf %34, %6 : vector<16x128xf32>
    %46 = arith.addf %44, %45 : vector<16x128xf32>
    %c1_i32 = arith.constant 1 : i32
    %47 = arith.index_cast %c1_i32 : i32 to index
    %c0_16 = arith.constant 0 : index
    %c0_17 = arith.constant 0 : index
    %48 = vector.load %arg1[%47, %c0_16, %c0_17] : memref<8x16x16xbf16, #tpu.memory_space<vmem>>, vector<1x16x16xbf16>
    %49 = vector.shape_cast %48 : vector<1x16x16xbf16> to vector<16x16xbf16>
    %cst_18 = arith.constant dense<0.000000e+00> : vector<16x384xf32>
    %50 = tpu.matmul %49, %0, %cst_18 {dimension_numbers = #tpu.dot_dimension_numbers<[1], [0], [0], [1], [0, 0, 1, 1], [], []>} : vector<16x16xbf16>, vector<16x384xbf16>, vector<16x384xf32> -> vector<16x384xf32>
    %51 = vector.broadcast %2 : vector<1x384xf32> to vector<16x384xf32>
    %52 = arith.addf %50, %51 : vector<16x384xf32>
    %53 = arith.truncf %46 : vector<16x128xf32> to vector<16x128xbf16>
    %cst_19 = arith.constant dense<0.000000e+00> : vector<16x384xf32>
    %54 = tpu.matmul %53, %1, %cst_19 {dimension_numbers = #tpu.dot_dimension_numbers<[1], [0], [0], [1], [0, 0, 1, 1], [], []>} : vector<16x128xbf16>, vector<128x384xbf16>, vector<16x384xf32> -> vector<16x384xf32>
    %55 = vector.extract_strided_slice %52 {offsets = [0, 0], sizes = [16, 128], strides = [1, 1]} : vector<16x384xf32> to vector<16x128xf32>
    %56 = vector.extract_strided_slice %54 {offsets = [0, 0], sizes = [16, 128], strides = [1, 1]} : vector<16x384xf32> to vector<16x128xf32>
    %57 = arith.addf %55, %56 : vector<16x128xf32>
    %58 = vector.broadcast %3 : vector<1x128xf32> to vector<16x128xf32>
    %59 = arith.addf %57, %58 : vector<16x128xf32>
    %60 = arith.negf %59 : vector<16x128xf32>
    %61 = math.exp %60 : vector<16x128xf32>
    %cst_20 = arith.constant 1.000000e+00 : f32
    %62 = vector.broadcast %cst_20 : f32 to vector<16x128xf32>
    %63 = arith.addf %62, %61 : vector<16x128xf32>
    %64 = arith.divf %62, %63 : vector<16x128xf32>
    %65 = vector.extract_strided_slice %52 {offsets = [0, 128], sizes = [16, 128], strides = [1, 1]} : vector<16x384xf32> to vector<16x128xf32>
    %66 = vector.extract_strided_slice %54 {offsets = [0, 128], sizes = [16, 128], strides = [1, 1]} : vector<16x384xf32> to vector<16x128xf32>
    %67 = arith.addf %65, %66 : vector<16x128xf32>
    %68 = vector.broadcast %4 : vector<1x128xf32> to vector<16x128xf32>
    %69 = arith.addf %67, %68 : vector<16x128xf32>
    %70 = arith.negf %69 : vector<16x128xf32>
    %71 = math.exp %70 : vector<16x128xf32>
    %cst_21 = arith.constant 1.000000e+00 : f32
    %72 = vector.broadcast %cst_21 : f32 to vector<16x128xf32>
    %73 = arith.addf %72, %71 : vector<16x128xf32>
    %74 = arith.divf %72, %73 : vector<16x128xf32>
    %75 = vector.extract_strided_slice %52 {offsets = [0, 256], sizes = [16, 128], strides = [1, 1]} : vector<16x384xf32> to vector<16x128xf32>
    %76 = vector.extract_strided_slice %54 {offsets = [0, 256], sizes = [16, 128], strides = [1, 1]} : vector<16x384xf32> to vector<16x128xf32>
    %77 = vector.broadcast %5 : vector<1x128xf32> to vector<16x128xf32>
    %78 = arith.addf %76, %77 : vector<16x128xf32>
    %79 = arith.mulf %64, %78 : vector<16x128xf32>
    %80 = arith.addf %75, %79 : vector<16x128xf32>
    %81 = math.tanh %80 : vector<16x128xf32>
    %cst_22 = arith.constant 1.000000e+00 : f32
    %82 = vector.broadcast %cst_22 : f32 to vector<16x128xf32>
    %83 = arith.subf %82, %74 : vector<16x128xf32>
    %84 = arith.mulf %83, %81 : vector<16x128xf32>
    %85 = arith.mulf %74, %46 : vector<16x128xf32>
    %86 = arith.addf %84, %85 : vector<16x128xf32>
    %c2_i32 = arith.constant 2 : i32
    %87 = arith.index_cast %c2_i32 : i32 to index
    %c0_23 = arith.constant 0 : index
    %c0_24 = arith.constant 0 : index
    %88 = vector.load %arg1[%87, %c0_23, %c0_24] : memref<8x16x16xbf16, #tpu.memory_space<vmem>>, vector<1x16x16xbf16>
    %89 = vector.shape_cast %88 : vector<1x16x16xbf16> to vector<16x16xbf16>
    %cst_25 = arith.constant dense<0.000000e+00> : vector<16x384xf32>
    %90 = tpu.matmul %89, %0, %cst_25 {dimension_numbers = #tpu.dot_dimension_numbers<[1], [0], [0], [1], [0, 0, 1, 1], [], []>} : vector<16x16xbf16>, vector<16x384xbf16>, vector<16x384xf32> -> vector<16x384xf32>
    %91 = vector.broadcast %2 : vector<1x384xf32> to vector<16x384xf32>
    %92 = arith.addf %90, %91 : vector<16x384xf32>
    %93 = arith.truncf %86 : vector<16x128xf32> to vector<16x128xbf16>
    %cst_26 = arith.constant dense<0.000000e+00> : vector<16x384xf32>
    %94 = tpu.matmul %93, %1, %cst_26 {dimension_numbers = #tpu.dot_dimension_numbers<[1], [0], [0], [1], [0, 0, 1, 1], [], []>} : vector<16x128xbf16>, vector<128x384xbf16>, vector<16x384xf32> -> vector<16x384xf32>
    %95 = vector.extract_strided_slice %92 {offsets = [0, 0], sizes = [16, 128], strides = [1, 1]} : vector<16x384xf32> to vector<16x128xf32>
    %96 = vector.extract_strided_slice %94 {offsets = [0, 0], sizes = [16, 128], strides = [1, 1]} : vector<16x384xf32> to vector<16x128xf32>
    %97 = arith.addf %95, %96 : vector<16x128xf32>
    %98 = vector.broadcast %3 : vector<1x128xf32> to vector<16x128xf32>
    %99 = arith.addf %97, %98 : vector<16x128xf32>
    %100 = arith.negf %99 : vector<16x128xf32>
    %101 = math.exp %100 : vector<16x128xf32>
    %cst_27 = arith.constant 1.000000e+00 : f32
    %102 = vector.broadcast %cst_27 : f32 to vector<16x128xf32>
    %103 = arith.addf %102, %101 : vector<16x128xf32>
    %104 = arith.divf %102, %103 : vector<16x128xf32>
    %105 = vector.extract_strided_slice %92 {offsets = [0, 128], sizes = [16, 128], strides = [1, 1]} : vector<16x384xf32> to vector<16x128xf32>
    %106 = vector.extract_strided_slice %94 {offsets = [0, 128], sizes = [16, 128], strides = [1, 1]} : vector<16x384xf32> to vector<16x128xf32>
    %107 = arith.addf %105, %106 : vector<16x128xf32>
    %108 = vector.broadcast %4 : vector<1x128xf32> to vector<16x128xf32>
    %109 = arith.addf %107, %108 : vector<16x128xf32>
    %110 = arith.negf %109 : vector<16x128xf32>
    %111 = math.exp %110 : vector<16x128xf32>
    %cst_28 = arith.constant 1.000000e+00 : f32
    %112 = vector.broadcast %cst_28 : f32 to vector<16x128xf32>
    %113 = arith.addf %112, %111 : vector<16x128xf32>
    %114 = arith.divf %112, %113 : vector<16x128xf32>
    %115 = vector.extract_strided_slice %92 {offsets = [0, 256], sizes = [16, 128], strides = [1, 1]} : vector<16x384xf32> to vector<16x128xf32>
    %116 = vector.extract_strided_slice %94 {offsets = [0, 256], sizes = [16, 128], strides = [1, 1]} : vector<16x384xf32> to vector<16x128xf32>
    %117 = vector.broadcast %5 : vector<1x128xf32> to vector<16x128xf32>
    %118 = arith.addf %116, %117 : vector<16x128xf32>
    %119 = arith.mulf %104, %118 : vector<16x128xf32>
    %120 = arith.addf %115, %119 : vector<16x128xf32>
    %121 = math.tanh %120 : vector<16x128xf32>
    %cst_29 = arith.constant 1.000000e+00 : f32
    %122 = vector.broadcast %cst_29 : f32 to vector<16x128xf32>
    %123 = arith.subf %122, %114 : vector<16x128xf32>
    %124 = arith.mulf %123, %121 : vector<16x128xf32>
    %125 = arith.mulf %114, %86 : vector<16x128xf32>
    %126 = arith.addf %124, %125 : vector<16x128xf32>
    %c3_i32 = arith.constant 3 : i32
    %127 = arith.index_cast %c3_i32 : i32 to index
    %c0_30 = arith.constant 0 : index
    %c0_31 = arith.constant 0 : index
    %128 = vector.load %arg1[%127, %c0_30, %c0_31] : memref<8x16x16xbf16, #tpu.memory_space<vmem>>, vector<1x16x16xbf16>
    %129 = vector.shape_cast %128 : vector<1x16x16xbf16> to vector<16x16xbf16>
    %cst_32 = arith.constant dense<0.000000e+00> : vector<16x384xf32>
    %130 = tpu.matmul %129, %0, %cst_32 {dimension_numbers = #tpu.dot_dimension_numbers<[1], [0], [0], [1], [0, 0, 1, 1], [], []>} : vector<16x16xbf16>, vector<16x384xbf16>, vector<16x384xf32> -> vector<16x384xf32>
    %131 = vector.broadcast %2 : vector<1x384xf32> to vector<16x384xf32>
    %132 = arith.addf %130, %131 : vector<16x384xf32>
    %133 = arith.truncf %126 : vector<16x128xf32> to vector<16x128xbf16>
    %cst_33 = arith.constant dense<0.000000e+00> : vector<16x384xf32>
    %134 = tpu.matmul %133, %1, %cst_33 {dimension_numbers = #tpu.dot_dimension_numbers<[1], [0], [0], [1], [0, 0, 1, 1], [], []>} : vector<16x128xbf16>, vector<128x384xbf16>, vector<16x384xf32> -> vector<16x384xf32>
    %135 = vector.extract_strided_slice %132 {offsets = [0, 0], sizes = [16, 128], strides = [1, 1]} : vector<16x384xf32> to vector<16x128xf32>
    %136 = vector.extract_strided_slice %134 {offsets = [0, 0], sizes = [16, 128], strides = [1, 1]} : vector<16x384xf32> to vector<16x128xf32>
    %137 = arith.addf %135, %136 : vector<16x128xf32>
    %138 = vector.broadcast %3 : vector<1x128xf32> to vector<16x128xf32>
    %139 = arith.addf %137, %138 : vector<16x128xf32>
    %140 = arith.negf %139 : vector<16x128xf32>
    %141 = math.exp %140 : vector<16x128xf32>
    %cst_34 = arith.constant 1.000000e+00 : f32
    %142 = vector.broadcast %cst_34 : f32 to vector<16x128xf32>
    %143 = arith.addf %142, %141 : vector<16x128xf32>
    %144 = arith.divf %142, %143 : vector<16x128xf32>
    %145 = vector.extract_strided_slice %132 {offsets = [0, 128], sizes = [16, 128], strides = [1, 1]} : vector<16x384xf32> to vector<16x128xf32>
    %146 = vector.extract_strided_slice %134 {offsets = [0, 128], sizes = [16, 128], strides = [1, 1]} : vector<16x384xf32> to vector<16x128xf32>
    %147 = arith.addf %145, %146 : vector<16x128xf32>
    %148 = vector.broadcast %4 : vector<1x128xf32> to vector<16x128xf32>
    %149 = arith.addf %147, %148 : vector<16x128xf32>
    %150 = arith.negf %149 : vector<16x128xf32>
    %151 = math.exp %150 : vector<16x128xf32>
    %cst_35 = arith.constant 1.000000e+00 : f32
    %152 = vector.broadcast %cst_35 : f32 to vector<16x128xf32>
    %153 = arith.addf %152, %151 : vector<16x128xf32>
    %154 = arith.divf %152, %153 : vector<16x128xf32>
    %155 = vector.extract_strided_slice %132 {offsets = [0, 256], sizes = [16, 128], strides = [1, 1]} : vector<16x384xf32> to vector<16x128xf32>
    %156 = vector.extract_strided_slice %134 {offsets = [0, 256], sizes = [16, 128], strides = [1, 1]} : vector<16x384xf32> to vector<16x128xf32>
    %157 = vector.broadcast %5 : vector<1x128xf32> to vector<16x128xf32>
    %158 = arith.addf %156, %157 : vector<16x128xf32>
    %159 = arith.mulf %144, %158 : vector<16x128xf32>
    %160 = arith.addf %155, %159 : vector<16x128xf32>
    %161 = math.tanh %160 : vector<16x128xf32>
    %cst_36 = arith.constant 1.000000e+00 : f32
    %162 = vector.broadcast %cst_36 : f32 to vector<16x128xf32>
    %163 = arith.subf %162, %154 : vector<16x128xf32>
    %164 = arith.mulf %163, %161 : vector<16x128xf32>
    %165 = arith.mulf %154, %126 : vector<16x128xf32>
    %166 = arith.addf %164, %165 : vector<16x128xf32>
    %c4_i32 = arith.constant 4 : i32
    %167 = arith.index_cast %c4_i32 : i32 to index
    %c0_37 = arith.constant 0 : index
    %c0_38 = arith.constant 0 : index
    %168 = vector.load %arg1[%167, %c0_37, %c0_38] : memref<8x16x16xbf16, #tpu.memory_space<vmem>>, vector<1x16x16xbf16>
    %169 = vector.shape_cast %168 : vector<1x16x16xbf16> to vector<16x16xbf16>
    %cst_39 = arith.constant dense<0.000000e+00> : vector<16x384xf32>
    %170 = tpu.matmul %169, %0, %cst_39 {dimension_numbers = #tpu.dot_dimension_numbers<[1], [0], [0], [1], [0, 0, 1, 1], [], []>} : vector<16x16xbf16>, vector<16x384xbf16>, vector<16x384xf32> -> vector<16x384xf32>
    %171 = vector.broadcast %2 : vector<1x384xf32> to vector<16x384xf32>
    %172 = arith.addf %170, %171 : vector<16x384xf32>
    %173 = arith.truncf %166 : vector<16x128xf32> to vector<16x128xbf16>
    %cst_40 = arith.constant dense<0.000000e+00> : vector<16x384xf32>
    %174 = tpu.matmul %173, %1, %cst_40 {dimension_numbers = #tpu.dot_dimension_numbers<[1], [0], [0], [1], [0, 0, 1, 1], [], []>} : vector<16x128xbf16>, vector<128x384xbf16>, vector<16x384xf32> -> vector<16x384xf32>
    %175 = vector.extract_strided_slice %172 {offsets = [0, 0], sizes = [16, 128], strides = [1, 1]} : vector<16x384xf32> to vector<16x128xf32>
    %176 = vector.extract_strided_slice %174 {offsets = [0, 0], sizes = [16, 128], strides = [1, 1]} : vector<16x384xf32> to vector<16x128xf32>
    %177 = arith.addf %175, %176 : vector<16x128xf32>
    %178 = vector.broadcast %3 : vector<1x128xf32> to vector<16x128xf32>
    %179 = arith.addf %177, %178 : vector<16x128xf32>
    %180 = arith.negf %179 : vector<16x128xf32>
    %181 = math.exp %180 : vector<16x128xf32>
    %cst_41 = arith.constant 1.000000e+00 : f32
    %182 = vector.broadcast %cst_41 : f32 to vector<16x128xf32>
    %183 = arith.addf %182, %181 : vector<16x128xf32>
    %184 = arith.divf %182, %183 : vector<16x128xf32>
    %185 = vector.extract_strided_slice %172 {offsets = [0, 128], sizes = [16, 128], strides = [1, 1]} : vector<16x384xf32> to vector<16x128xf32>
    %186 = vector.extract_strided_slice %174 {offsets = [0, 128], sizes = [16, 128], strides = [1, 1]} : vector<16x384xf32> to vector<16x128xf32>
    %187 = arith.addf %185, %186 : vector<16x128xf32>
    %188 = vector.broadcast %4 : vector<1x128xf32> to vector<16x128xf32>
    %189 = arith.addf %187, %188 : vector<16x128xf32>
    %190 = arith.negf %189 : vector<16x128xf32>
    %191 = math.exp %190 : vector<16x128xf32>
    %cst_42 = arith.constant 1.000000e+00 : f32
    %192 = vector.broadcast %cst_42 : f32 to vector<16x128xf32>
    %193 = arith.addf %192, %191 : vector<16x128xf32>
    %194 = arith.divf %192, %193 : vector<16x128xf32>
    %195 = vector.extract_strided_slice %172 {offsets = [0, 256], sizes = [16, 128], strides = [1, 1]} : vector<16x384xf32> to vector<16x128xf32>
    %196 = vector.extract_strided_slice %174 {offsets = [0, 256], sizes = [16, 128], strides = [1, 1]} : vector<16x384xf32> to vector<16x128xf32>
    %197 = vector.broadcast %5 : vector<1x128xf32> to vector<16x128xf32>
    %198 = arith.addf %196, %197 : vector<16x128xf32>
    %199 = arith.mulf %184, %198 : vector<16x128xf32>
    %200 = arith.addf %195, %199 : vector<16x128xf32>
    %201 = math.tanh %200 : vector<16x128xf32>
    %cst_43 = arith.constant 1.000000e+00 : f32
    %202 = vector.broadcast %cst_43 : f32 to vector<16x128xf32>
    %203 = arith.subf %202, %194 : vector<16x128xf32>
    %204 = arith.mulf %203, %201 : vector<16x128xf32>
    %205 = arith.mulf %194, %166 : vector<16x128xf32>
    %206 = arith.addf %204, %205 : vector<16x128xf32>
    %c5_i32 = arith.constant 5 : i32
    %207 = arith.index_cast %c5_i32 : i32 to index
    %c0_44 = arith.constant 0 : index
    %c0_45 = arith.constant 0 : index
    %208 = vector.load %arg1[%207, %c0_44, %c0_45] : memref<8x16x16xbf16, #tpu.memory_space<vmem>>, vector<1x16x16xbf16>
    %209 = vector.shape_cast %208 : vector<1x16x16xbf16> to vector<16x16xbf16>
    %cst_46 = arith.constant dense<0.000000e+00> : vector<16x384xf32>
    %210 = tpu.matmul %209, %0, %cst_46 {dimension_numbers = #tpu.dot_dimension_numbers<[1], [0], [0], [1], [0, 0, 1, 1], [], []>} : vector<16x16xbf16>, vector<16x384xbf16>, vector<16x384xf32> -> vector<16x384xf32>
    %211 = vector.broadcast %2 : vector<1x384xf32> to vector<16x384xf32>
    %212 = arith.addf %210, %211 : vector<16x384xf32>
    %213 = arith.truncf %206 : vector<16x128xf32> to vector<16x128xbf16>
    %cst_47 = arith.constant dense<0.000000e+00> : vector<16x384xf32>
    %214 = tpu.matmul %213, %1, %cst_47 {dimension_numbers = #tpu.dot_dimension_numbers<[1], [0], [0], [1], [0, 0, 1, 1], [], []>} : vector<16x128xbf16>, vector<128x384xbf16>, vector<16x384xf32> -> vector<16x384xf32>
    %215 = vector.extract_strided_slice %212 {offsets = [0, 0], sizes = [16, 128], strides = [1, 1]} : vector<16x384xf32> to vector<16x128xf32>
    %216 = vector.extract_strided_slice %214 {offsets = [0, 0], sizes = [16, 128], strides = [1, 1]} : vector<16x384xf32> to vector<16x128xf32>
    %217 = arith.addf %215, %216 : vector<16x128xf32>
    %218 = vector.broadcast %3 : vector<1x128xf32> to vector<16x128xf32>
    %219 = arith.addf %217, %218 : vector<16x128xf32>
    %220 = arith.negf %219 : vector<16x128xf32>
    %221 = math.exp %220 : vector<16x128xf32>
    %cst_48 = arith.constant 1.000000e+00 : f32
    %222 = vector.broadcast %cst_48 : f32 to vector<16x128xf32>
    %223 = arith.addf %222, %221 : vector<16x128xf32>
    %224 = arith.divf %222, %223 : vector<16x128xf32>
    %225 = vector.extract_strided_slice %212 {offsets = [0, 128], sizes = [16, 128], strides = [1, 1]} : vector<16x384xf32> to vector<16x128xf32>
    %226 = vector.extract_strided_slice %214 {offsets = [0, 128], sizes = [16, 128], strides = [1, 1]} : vector<16x384xf32> to vector<16x128xf32>
    %227 = arith.addf %225, %226 : vector<16x128xf32>
    %228 = vector.broadcast %4 : vector<1x128xf32> to vector<16x128xf32>
    %229 = arith.addf %227, %228 : vector<16x128xf32>
    %230 = arith.negf %229 : vector<16x128xf32>
    %231 = math.exp %230 : vector<16x128xf32>
    %cst_49 = arith.constant 1.000000e+00 : f32
    %232 = vector.broadcast %cst_49 : f32 to vector<16x128xf32>
    %233 = arith.addf %232, %231 : vector<16x128xf32>
    %234 = arith.divf %232, %233 : vector<16x128xf32>
    %235 = vector.extract_strided_slice %212 {offsets = [0, 256], sizes = [16, 128], strides = [1, 1]} : vector<16x384xf32> to vector<16x128xf32>
    %236 = vector.extract_strided_slice %214 {offsets = [0, 256], sizes = [16, 128], strides = [1, 1]} : vector<16x384xf32> to vector<16x128xf32>
    %237 = vector.broadcast %5 : vector<1x128xf32> to vector<16x128xf32>
    %238 = arith.addf %236, %237 : vector<16x128xf32>
    %239 = arith.mulf %224, %238 : vector<16x128xf32>
    %240 = arith.addf %235, %239 : vector<16x128xf32>
    %241 = math.tanh %240 : vector<16x128xf32>
    %cst_50 = arith.constant 1.000000e+00 : f32
    %242 = vector.broadcast %cst_50 : f32 to vector<16x128xf32>
    %243 = arith.subf %242, %234 : vector<16x128xf32>
    %244 = arith.mulf %243, %241 : vector<16x128xf32>
    %245 = arith.mulf %234, %206 : vector<16x128xf32>
    %246 = arith.addf %244, %245 : vector<16x128xf32>
    %c6_i32 = arith.constant 6 : i32
    %247 = arith.index_cast %c6_i32 : i32 to index
    %c0_51 = arith.constant 0 : index
    %c0_52 = arith.constant 0 : index
    %248 = vector.load %arg1[%247, %c0_51, %c0_52] : memref<8x16x16xbf16, #tpu.memory_space<vmem>>, vector<1x16x16xbf16>
    %249 = vector.shape_cast %248 : vector<1x16x16xbf16> to vector<16x16xbf16>
    %cst_53 = arith.constant dense<0.000000e+00> : vector<16x384xf32>
    %250 = tpu.matmul %249, %0, %cst_53 {dimension_numbers = #tpu.dot_dimension_numbers<[1], [0], [0], [1], [0, 0, 1, 1], [], []>} : vector<16x16xbf16>, vector<16x384xbf16>, vector<16x384xf32> -> vector<16x384xf32>
    %251 = vector.broadcast %2 : vector<1x384xf32> to vector<16x384xf32>
    %252 = arith.addf %250, %251 : vector<16x384xf32>
    %253 = arith.truncf %246 : vector<16x128xf32> to vector<16x128xbf16>
    %cst_54 = arith.constant dense<0.000000e+00> : vector<16x384xf32>
    %254 = tpu.matmul %253, %1, %cst_54 {dimension_numbers = #tpu.dot_dimension_numbers<[1], [0], [0], [1], [0, 0, 1, 1], [], []>} : vector<16x128xbf16>, vector<128x384xbf16>, vector<16x384xf32> -> vector<16x384xf32>
    %255 = vector.extract_strided_slice %252 {offsets = [0, 0], sizes = [16, 128], strides = [1, 1]} : vector<16x384xf32> to vector<16x128xf32>
    %256 = vector.extract_strided_slice %254 {offsets = [0, 0], sizes = [16, 128], strides = [1, 1]} : vector<16x384xf32> to vector<16x128xf32>
    %257 = arith.addf %255, %256 : vector<16x128xf32>
    %258 = vector.broadcast %3 : vector<1x128xf32> to vector<16x128xf32>
    %259 = arith.addf %257, %258 : vector<16x128xf32>
    %260 = arith.negf %259 : vector<16x128xf32>
    %261 = math.exp %260 : vector<16x128xf32>
    %cst_55 = arith.constant 1.000000e+00 : f32
    %262 = vector.broadcast %cst_55 : f32 to vector<16x128xf32>
    %263 = arith.addf %262, %261 : vector<16x128xf32>
    %264 = arith.divf %262, %263 : vector<16x128xf32>
    %265 = vector.extract_strided_slice %252 {offsets = [0, 128], sizes = [16, 128], strides = [1, 1]} : vector<16x384xf32> to vector<16x128xf32>
    %266 = vector.extract_strided_slice %254 {offsets = [0, 128], sizes = [16, 128], strides = [1, 1]} : vector<16x384xf32> to vector<16x128xf32>
    %267 = arith.addf %265, %266 : vector<16x128xf32>
    %268 = vector.broadcast %4 : vector<1x128xf32> to vector<16x128xf32>
    %269 = arith.addf %267, %268 : vector<16x128xf32>
    %270 = arith.negf %269 : vector<16x128xf32>
    %271 = math.exp %270 : vector<16x128xf32>
    %cst_56 = arith.constant 1.000000e+00 : f32
    %272 = vector.broadcast %cst_56 : f32 to vector<16x128xf32>
    %273 = arith.addf %272, %271 : vector<16x128xf32>
    %274 = arith.divf %272, %273 : vector<16x128xf32>
    %275 = vector.extract_strided_slice %252 {offsets = [0, 256], sizes = [16, 128], strides = [1, 1]} : vector<16x384xf32> to vector<16x128xf32>
    %276 = vector.extract_strided_slice %254 {offsets = [0, 256], sizes = [16, 128], strides = [1, 1]} : vector<16x384xf32> to vector<16x128xf32>
    %277 = vector.broadcast %5 : vector<1x128xf32> to vector<16x128xf32>
    %278 = arith.addf %276, %277 : vector<16x128xf32>
    %279 = arith.mulf %264, %278 : vector<16x128xf32>
    %280 = arith.addf %275, %279 : vector<16x128xf32>
    %281 = math.tanh %280 : vector<16x128xf32>
    %cst_57 = arith.constant 1.000000e+00 : f32
    %282 = vector.broadcast %cst_57 : f32 to vector<16x128xf32>
    %283 = arith.subf %282, %274 : vector<16x128xf32>
    %284 = arith.mulf %283, %281 : vector<16x128xf32>
    %285 = arith.mulf %274, %246 : vector<16x128xf32>
    %286 = arith.addf %284, %285 : vector<16x128xf32>
    %c7_i32 = arith.constant 7 : i32
    %287 = arith.index_cast %c7_i32 : i32 to index
    %c0_58 = arith.constant 0 : index
    %c0_59 = arith.constant 0 : index
    %288 = vector.load %arg1[%287, %c0_58, %c0_59] : memref<8x16x16xbf16, #tpu.memory_space<vmem>>, vector<1x16x16xbf16>
    %289 = vector.shape_cast %288 : vector<1x16x16xbf16> to vector<16x16xbf16>
    %cst_60 = arith.constant dense<0.000000e+00> : vector<16x384xf32>
    %290 = tpu.matmul %289, %0, %cst_60 {dimension_numbers = #tpu.dot_dimension_numbers<[1], [0], [0], [1], [0, 0, 1, 1], [], []>} : vector<16x16xbf16>, vector<16x384xbf16>, vector<16x384xf32> -> vector<16x384xf32>
    %291 = vector.broadcast %2 : vector<1x384xf32> to vector<16x384xf32>
    %292 = arith.addf %290, %291 : vector<16x384xf32>
    %293 = arith.truncf %286 : vector<16x128xf32> to vector<16x128xbf16>
    %cst_61 = arith.constant dense<0.000000e+00> : vector<16x384xf32>
    %294 = tpu.matmul %293, %1, %cst_61 {dimension_numbers = #tpu.dot_dimension_numbers<[1], [0], [0], [1], [0, 0, 1, 1], [], []>} : vector<16x128xbf16>, vector<128x384xbf16>, vector<16x384xf32> -> vector<16x384xf32>
    %295 = vector.extract_strided_slice %292 {offsets = [0, 0], sizes = [16, 128], strides = [1, 1]} : vector<16x384xf32> to vector<16x128xf32>
    %296 = vector.extract_strided_slice %294 {offsets = [0, 0], sizes = [16, 128], strides = [1, 1]} : vector<16x384xf32> to vector<16x128xf32>
    %297 = arith.addf %295, %296 : vector<16x128xf32>
    %298 = vector.broadcast %3 : vector<1x128xf32> to vector<16x128xf32>
    %299 = arith.addf %297, %298 : vector<16x128xf32>
    %300 = arith.negf %299 : vector<16x128xf32>
    %301 = math.exp %300 : vector<16x128xf32>
    %cst_62 = arith.constant 1.000000e+00 : f32
    %302 = vector.broadcast %cst_62 : f32 to vector<16x128xf32>
    %303 = arith.addf %302, %301 : vector<16x128xf32>
    %304 = arith.divf %302, %303 : vector<16x128xf32>
    %305 = vector.extract_strided_slice %292 {offsets = [0, 128], sizes = [16, 128], strides = [1, 1]} : vector<16x384xf32> to vector<16x128xf32>
    %306 = vector.extract_strided_slice %294 {offsets = [0, 128], sizes = [16, 128], strides = [1, 1]} : vector<16x384xf32> to vector<16x128xf32>
    %307 = arith.addf %305, %306 : vector<16x128xf32>
    %308 = vector.broadcast %4 : vector<1x128xf32> to vector<16x128xf32>
    %309 = arith.addf %307, %308 : vector<16x128xf32>
    %310 = arith.negf %309 : vector<16x128xf32>
    %311 = math.exp %310 : vector<16x128xf32>
    %cst_63 = arith.constant 1.000000e+00 : f32
    %312 = vector.broadcast %cst_63 : f32 to vector<16x128xf32>
    %313 = arith.addf %312, %311 : vector<16x128xf32>
    %314 = arith.divf %312, %313 : vector<16x128xf32>
    %315 = vector.extract_strided_slice %292 {offsets = [0, 256], sizes = [16, 128], strides = [1, 1]} : vector<16x384xf32> to vector<16x128xf32>
    %316 = vector.extract_strided_slice %294 {offsets = [0, 256], sizes = [16, 128], strides = [1, 1]} : vector<16x384xf32> to vector<16x128xf32>
    %317 = vector.broadcast %5 : vector<1x128xf32> to vector<16x128xf32>
    %318 = arith.addf %316, %317 : vector<16x128xf32>
    %319 = arith.mulf %304, %318 : vector<16x128xf32>
    %320 = arith.addf %315, %319 : vector<16x128xf32>
    %321 = math.tanh %320 : vector<16x128xf32>
    %cst_64 = arith.constant 1.000000e+00 : f32
    %322 = vector.broadcast %cst_64 : f32 to vector<16x128xf32>
    %323 = arith.subf %322, %314 : vector<16x128xf32>
    %324 = arith.mulf %323, %321 : vector<16x128xf32>
    %325 = arith.mulf %314, %286 : vector<16x128xf32>
    %326 = arith.addf %324, %325 : vector<16x128xf32>
    %c8_i32 = arith.constant 8 : i32
    %327 = arith.truncf %326 : vector<16x128xf32> to vector<16x128xbf16>
    %c0_65 = arith.constant 0 : index
    %c0_66 = arith.constant 0 : index
    %328 = vector.load %arg6[%c0_65, %c0_66] : memref<128x128xbf16, #tpu.memory_space<vmem>>, vector<128x128xbf16>
    %cst_67 = arith.constant dense<0.000000e+00> : vector<16x128xf32>
    %329 = tpu.matmul %327, %328, %cst_67 {dimension_numbers = #tpu.dot_dimension_numbers<[1], [0], [0], [1], [0, 0, 1, 1], [], []>} : vector<16x128xbf16>, vector<128x128xbf16>, vector<16x128xf32> -> vector<16x128xf32>
    %c0_68 = arith.constant 0 : index
    %c0_69 = arith.constant 0 : index
    %330 = vector.load %arg7[%c0_68, %c0_69] : memref<1x128xf32, #tpu.memory_space<vmem>>, vector<1x128xf32>
    %331 = vector.broadcast %330 : vector<1x128xf32> to vector<16x128xf32>
    %332 = arith.addf %329, %331 : vector<16x128xf32>
    %c0_70 = arith.constant 0 : index
    %c0_71 = arith.constant 0 : index
    %333 = vector.load %arg8[%c0_70, %c0_71] : memref<16x128xf32, #tpu.memory_space<vmem>>, vector<16x128xf32>
    tpu.vector_store %arg8[%c0_70, %c0_71], %332 {strides = array<i32>} : memref<16x128xf32, #tpu.memory_space<vmem>>, vector<16x128xf32>,
    return
  }
  func.func @transform_0(%arg0: i32) -> (i32, i32, i32) {
    %c0_i32 = arith.constant 0 : i32
    %c0_i32_0 = arith.constant 0 : i32
    %c0_i32_1 = arith.constant 0 : i32
    return %c0_i32, %arg0, %c0_i32_0 : i32, i32, i32
  }
  func.func @transform_1(%arg0: i32) -> (i32, i32) {
    %c0_i32 = arith.constant 0 : i32
    %c0_i32_0 = arith.constant 0 : i32
    %c0_i32_1 = arith.constant 0 : i32
    return %c0_i32, %c0_i32_0 : i32, i32
  }
  func.func @transform_2(%arg0: i32) -> (i32, i32) {
    %c0_i32 = arith.constant 0 : i32
    %c0_i32_0 = arith.constant 0 : i32
    %c0_i32_1 = arith.constant 0 : i32
    return %c0_i32, %c0_i32_0 : i32, i32
  }
  func.func @transform_3(%arg0: i32) -> (i32, i32) {
    %c0_i32 = arith.constant 0 : i32
    %c0_i32_0 = arith.constant 0 : i32
    %c0_i32_1 = arith.constant 0 : i32
    return %c0_i32, %c0_i32_0 : i32, i32
  }
  func.func @transform_4(%arg0: i32) -> (i32, i32) {
    %c0_i32 = arith.constant 0 : i32
    %c0_i32_0 = arith.constant 0 : i32
    %c0_i32_1 = arith.constant 0 : i32
    return %c0_i32, %c0_i32_0 : i32, i32
  }
  func.func @transform_5(%arg0: i32) -> (i32, i32) {
    %c0_i32 = arith.constant 0 : i32
    %c0_i32_0 = arith.constant 0 : i32
    %c0_i32_1 = arith.constant 0 : i32
    return %c0_i32, %c0_i32_0 : i32, i32
  }
  func.func @transform_6(%arg0: i32) -> (i32, i32) {
    %c0_i32 = arith.constant 0 : i32
    %c0_i32_0 = arith.constant 0 : i32
    %c0_i32_1 = arith.constant 0 : i32
    return %c0_i32, %c0_i32_0 : i32, i32
  }
  func.func @transform_7(%arg0: i32) -> (i32, i32) {
    %c0_i32 = arith.constant 0 : i32
    %c0_i32_0 = arith.constant 0 : i32
    return %arg0, %c0_i32 : i32, i32
  }
}

</mosaic_0001>

<bundles_post_ra>
// kernel: tpu_custom_call.1
= control target key start
LH: loop header
LB: loop body
LE: loop exit
PB: predicated region body
PF: predicated region fallthrough
CT: control target
= control target key end

     0   :  { %12 = vsyncpa [#allocation4], 0  ;;  %s4733_s0 = inlined_call_operand.vmem [shape: bf16[8,32,16], index: 0, kind: input, shape index: {}]   ;;  %s4734_s1 = inlined_call_operand.hbm [shape: bf16[16,384], index: 1, kind: input, shape index: {}]   ;;  %s4735_s2 = inlined_call_operand.vmem [shape: bf16[128,384], index: 2, kind: input, shape index: {}]   ;;  %s4736_s3 = inlined_call_operand.vmem [shape: f32[1,384], index: 3, kind: input, shape index: {}]   ;;  %s4737_s4 = inlined_call_operand.vmem [shape: f32[1,384], index: 4, kind: input, shape index: {}]   ;;  %s4738_s5 = inlined_call_operand.hbm [shape: bf16[128,128], index: 5, kind: input, shape index: {}]   ;;  %s4739_s6 = inlined_call_operand.vmem [shape: f32[1,128], index: 6, kind: input, shape index: {}]   ;;  %s4740_s7 = inlined_call_operand.hbm [shape: f32[32,128], index: 7, kind: output, shape index: {}]  }
   0x1   :  { %13 = vsyncpa [#allocation7], 0 }
   0x2   :  { %14 = vsyncpa [#allocation5], 0 }
   0x3   :  { %16 = vsyncpa [#allocation5 + $0x1], 0  ;;  %s3681_s24 = smov 0   ;;  %s3683_s25 = smov 0  }
   0x4   :  { %s3685_s26 = smov 0   ;;  %s3687_s27 = smov 0  }
   0x5 LB: > { %s3702_s28 = sadd.s32 4294967295, %s3627_s27   ;;  %s2672_s29 = sadd.s32 4294967294, %s3627_s27   ;;  %s3627_s27 = sphi %s3687_s27, %s4761_s27   ;;  %s3623_s26 = sphi %s3685_s26, %s4765_s26   ;;  %s3619_s25 = sphi %s3683_s25, %s4764_s25   ;;  %s3615_s24 = sphi %s3681_s24, %s4763_s24  }
   0x6   : > { %s3706_s30 = sadd.s32 1, %s3627_s27   ;;  %s29_s8 = sadd.s32 1, %s3623_s26 }
   0x7   : > { %4746 = sst [smem:[#allocation12_spill]] %s3706_s30  ;;  %s26_s9 = ssub.s32 %s3627_s27, %s3706_s30 }
   0x8   : > { %p36_p0 = scmp.ne.s32.totalorder %s3623_s26, %s3619_s25  ;;  %p27_p1 = scmp.eq.s32.totalorder %s26_s9, 0 }
   0x9   : > { %p37_p2 = scmp.eq.s32.totalorder %s3627_s27, 0  ;;  %p192_p3 = scmp.eq.s32.totalorder %s3702_s28, 1 }
   0xa   : > { %p197_p4 = scmp.ne.s32.totalorder %s3619_s25, %s3615_s24  ;;  %p198_p7 = scmp.eq.s32.totalorder %s2672_s29, 1 }
   0xb   : > { %s3718_s10 = scalar_select %p27_p1, %s3623_s26, %s29_s8  }
   0xc   : > { %p3720_p5 = por %p37_p2, %p36_p0  ;;  %p3724_p6 = por %p192_p3, %p36_p0 }
   0xd   : > { %4747 = sst [smem:[#allocation13_spill]] %s3718_s10  ;;  %p2673_p8 = scmp.ge.s32.totalorder %s3627_s27, 1 }
   0xe   : > { %s4748_s11 = scalar_select %p3720_p5, 1, 0 }
   0xf   : > { %s4749_s12 = scalar_select %p3724_p6, 1, 0 }
  0x10   : > { %p205_p9 = scmp.lt.s32.totalorder %s3627_s27, 3  ;;  %p3730_p10 = por %p198_p7, %p197_p4 }
  0x11   : > { %p4741_p11 = scmp.eq.s32.totalorder %s3702_s28, 0  ;;  %s3629_s15 = smov [#allocation3]  }
  0x12   : > { %s4750_s13 = scalar_select %p3730_p10, 1, 0 }
  0x13   : > { %p3735_p12 = pnand %p2673_p8, %p205_p9  ;;  %s217_s16 = sshll.u32 %s3629_s15, 4  ;;  %s218_s16 = int_to_ptr.vmem [resolvable:$true] %s217_s16 }
  0x14   : > { %s3630_s18 = smov [#allocation6]   ;;  %s3501_s22 = scalar_lea.hbm %s4734_s1, 384 }
  0x15   : > { %s4751_s14 = scalar_select %p3735_p12, 1, 0 }
  0x16   : > { %p3200_p13 = pneg %p3735_p12  ;;  %s239_s19 = sshll.u32 %s3630_s18, 4  ;;  %s3747_s19 = int_to_ptr.vmem [resolvable:$true] %s239_s19 }
  0x17   : > { %p3502_p1 = scmp.ne.s32.totalorder %s4734_s1, %s3501_s22  ;;  %p3508_p7 = scmp.lt.u32.totalorder %s3501_s22, %s4734_s1 }
  0x18   : > { %p3743_p0 = pnand %p4741_p11, %p3200_p13 }
  0x1a   : > { %p3503_p2 = pneg %p3743_p0 }
  0x1c   : > { %p3504_p3 = pnand %p3503_p2, %p3502_p1 }
  0x1e   : > { %p3505_p4 = pneg %p3504_p3 }
  0x20   : > { %p3510_p8 = pnand %p3508_p7, %p3505_p4 }
  0x22   : > { %3513 = shalt.err (!%p3510_p8)
}
  0x23   : > { %s3514_s15 = scalar_lea.vmem %s218_s16, 384  ;;  %p3522_p10 = scmp.lt.s32.totalorder %s218_s16, %s218_s16 }
  0x24   : > { %p3515_p9 = scmp.ne.s32.totalorder %s218_s16, %s3514_s15  ;;  %p3523_p6 = scmp.lt.s32.totalorder %s3514_s15, %s3514_s15 }
  0x26   : > { %p3517_p13 = pnand %p3515_p9, %p3503_p2  ;;  %p3524_p12 = por %p3523_p6, %p3522_p10 }
  0x28   : > { %p3518_p11 = pneg %p3517_p13 }
  0x2a   : > { %p3525_p5 = pnand %p3524_p12, %p3518_p11 }
  0x2c   : > { %3528 = shalt.err (!%p3525_p5)
}
  0x2d   : > { %s3631_s18 = smov 192   ;;  %s3632_s20 = smov 12  }
  0x2e   : > { %3203 = dma.hbm_to_vmem [thread:$0]  (!%p3743_p0), %s4734_s1, 384, %s218_s16, [#allocation4], %s3631_s18, %s3631_s18, %s3632_s20  }
  0x2f   : > { %s3529_s8 = scalar_lea.hbm %s4738_s5, 1024 }
  0x30   : > { %p3530_p1 = scmp.ne.s32.totalorder %s4738_s5, %s3529_s8  ;;  %p3536_p10 = scmp.lt.u32.totalorder %s3529_s8, %s4738_s5 }
  0x32   : > { %p3532_p5 = pnand %p3530_p1, %p3503_p2 }
  0x34   : > { %p3533_p6 = pneg %p3532_p5 }
  0x36   : > { %p3538_p11 = pnand %p3536_p10, %p3533_p6 }
  0x38   : > { %3541 = shalt.err (!%p3538_p11)
}
  0x39   : > { %s3542_s16 = scalar_lea.vmem %s3747_s19, 1024  ;;  %p3550_p7 = scmp.lt.s32.totalorder %s3747_s19, %s3747_s19 }
  0x3a   : > { %p3543_p12 = scmp.ne.s32.totalorder %s3747_s19, %s3542_s16  ;;  %p3551_p8 = scmp.lt.s32.totalorder %s3542_s16, %s3542_s16 }
  0x3c   : > { %p3545_p3 = pnand %p3543_p12, %p3503_p2  ;;  %p3552_p9 = por %p3551_p8, %p3550_p7 }
  0x3e   : > { %p3546_p4 = pneg %p3545_p3 }
  0x40   : > { %p3553_p13 = pnand %p3552_p9, %p3546_p4 }
  0x42   : > { %3556 = shalt.err (!%p3553_p13)
}
  0x43   : > { %s3633_s30 = smov 64   ;;  %s3634_s10 = smov 4  }
  0x44   : > { %3206 = dma.hbm_to_vmem [thread:$0]  (!%p3743_p0), %s4738_s5, 1024, %s3747_s19, [#allocation7], %s3633_s30, %s3633_s30, %s3634_s10  }
  0x45   : > { %p2676_p1 = scmp.ge.s32.totalorder %s3627_s27, 2 }
  0x46   : > { %p4753_p2 = scmp.ne.s32.totalorder (!%p2676_p1), %s4748_s11, 0 }
  0x47   : > { %252 = sbr.rel (%p2676_p1) target bundleno = 86 (0x56), region = 40 }
  0x4e   : > { %255 = sbr.rel (!%p4753_p2) target bundleno = 86 (0x56), region = 44  ;;  %s257_s21 = sand.u32 (%p4753_p2), 1, %s3623_s26  }
  0x4f   : > { %s2799_s22 = sshll.u32 (%p4753_p2), %s3627_s27, 3  ;;  %s2677_s23 = sshll.u32 (%p4753_p2), %s257_s21, 6 }
  0x50   : > { %s262_s17 = scalar_lea.vmem (%p4753_p2), %s4733_s0, %s2799_s22  ;;  %s259_s19 = scalar_lea.vmem (%p4753_p2), [#allocation2], %s2677_s23 }
  0x51   : > { %v278_v0 = vld [vmem:[%s262_s17] sm:$0xff] (%p4753_p2)   ;;  %v282_v1 = vld [vmem:[%s262_s17 + $0x10] sm:$0xff] (%p4753_p2)  }
  0x52   : > { %v286_v2 = vld [vmem:[%s262_s17 + $0x20] sm:$0xff] (%p4753_p2)   ;;  %279 = vst [vmem:[%s259_s19] sm:$0xff] (%p4753_p2), %v278_v0   ;;  %283 = vst [vmem:[%s259_s19 + $0x8] sm:$0xff] (%p4753_p2), %v282_v1   ;;  %v290_v3 = vld [vmem:[%s262_s17 + $0x30] sm:$0xff] (%p4753_p2)  }
  0x53   : > { %287 = vst [vmem:[%s259_s19 + $0x10] sm:$0xff] (%p4753_p2), %v286_v2   ;;  %v294_v4 = vld [vmem:[%s262_s17 + $0x40] sm:$0xff] (%p4753_p2)   ;;  %v298_v5 = vld [vmem:[%s262_s17 + $0x50] sm:$0xff] (%p4753_p2)   ;;  %291 = vst [vmem:[%s259_s19 + $0x18] sm:$0xff] (%p4753_p2), %v290_v3  }
  0x54   : > { %295 = vst [vmem:[%s259_s19 + $0x20] sm:$0xff] (%p4753_p2), %v294_v4   ;;  %299 = vst [vmem:[%s259_s19 + $0x28] sm:$0xff] (%p4753_p2), %v298_v5   ;;  %v302_v6 = vld [vmem:[%s262_s17 + $0x60] sm:$0xff] (%p4753_p2)   ;;  %v306_v7 = vld [vmem:[%s262_s17 + $0x70] sm:$0xff] (%p4753_p2)  }
  0x55   : > { %303 = vst [vmem:[%s259_s19 + $0x30] sm:$0xff] %v302_v6   ;;  %307 = vst [vmem:[%s259_s19 + $0x38] sm:$0xff] %v306_v7  }
  0x56 PF: > { %p4754_p0 = scmp.ne.s32.totalorder %s4751_s14, 0 }
  0x57   : > { %s3809_s11 = sand.u32 (!%p4754_p0), 1, %s3619_s25   ;;  %p4755_p5 = scmp.eq.s32.totalorder (!%p4754_p0), %s3702_s28, 0 }
  0x58   : > { %367 = sbr.rel (%p4754_p0) target bundleno = 2488 (0x9b8), region = 85  ;;  %s2681_s9 = sshll.u32 (!%p4754_p0), %s3809_s11, 6 }
  0x59   : > { %s3812_s15 = scalar_lea.vmem (!%p4754_p0), [#allocation2], %s2681_s9 }
  0x5f   : > { %3602 = dma.done.wait (%p4755_p5), [#allocation4], 384   ;;  %p4756_p6 = pmov %p4755_p5 }
  0x60   : > { %p4757_p10 = pmov %p4755_p5 }
  0x61   : > { %3604 = vsyncadd (%p4756_p6), [#allocation4], 4294966912 }
  0x62   : > { %3606 = dma.done.wait (%p4757_p10), [#allocation7], 1024   ;;  %p4758_p11 = pmov %p4755_p5 }
  0x63   : > { %v3635_v8 = vmov 0   ;;  %v3636_v9 = vmov 0.0   ;;  %vm3637_vm0 = vmmov 0   ;;  %v3826_v10 = vld [vmem:[#allocation3 + $0x4] ss:$12 sps:$4 sm:$0xff]   ;;  %vm491_vm1 = vcmask 130048  }
  0x64   : > { %3608 = vsyncadd (%p4758_p11), [#allocation7], 4294966272  ;;  %527 = vmatprep.mubr.bf16.mxu0 %v3635_v8  ;;  %2898 = vmatprep.subr.bf16.mxu1 %v3636_v9  ;;  %v3828_v11 = vld [vmem:[#allocation3] ss:$12 sps:$4 sm:$0xff]   ;;  %v3834_v12 = vld [vmem:[%s4735_s2 + $0x4] ss:$12 sps:$4 sm:$0xff]   ;;  %v455_v43 = vlaneseq }
  0x65   : > { %2900 = vmatprep.mubr.msk.bf16.mxu1 %vm3637_vm0, %v3636_v9  ;;  %495 = vmatprep.subr.bf16.mxu0 %v3826_v10  ;;  %v3264_v13 = vld [vmem:[%s3812_s15] sm:$0xff]   ;;  %v3847_v15 = vld [vmem:[%s4735_s2 + $0x1c] ss:$12 sps:$4 sm:$0xff]   ;;  %v3875_v20 = vld [vmem:[%s4735_s2 + $0x4c] ss:$12 sps:$4 sm:$0xff]   ;;  %s2800_s30 = sshll.u32 %s3702_s28, 8 }
  0x66   : > { %496 = vmatpush1.bf16.msra.mxu0 %v3828_v11  ;;  %v3841_v14 = vld [vmem:[%s4735_s2] ss:$12 sps:$4 sm:$0xff]   ;;  %v3854_v16 = vld [vmem:[%s4735_s2 + $0x18] ss:$12 sps:$4 sm:$0xff]   ;;  %v3866_v18 = vld [vmem:[%s4735_s2 + $0x30] ss:$12 sps:$4 sm:$0xff]   ;;  %s4689_s20 = scalar_lea.hbm %s4740_s7, %s2800_s30 }
  0x67   : > { %707 = vmatprep.subr.bf16.mxu0 %v3834_v12  ;;  %v3861_v17 = vld [vmem:[%s4735_s2 + $0x34] ss:$12 sps:$4 sm:$0xff]   ;;  %v3894_v23 = vld [vmem:[%s4735_s2 + $0x64] ss:$12 sps:$4 sm:$0xff]   ;;  %v3916_v26 = vld [vmem:[%s4735_s2 + $0x7c] ss:$12 sps:$4 sm:$0xff]  }
  0x68   : > { %v3869_v19 = vld [vmem:[#allocation3 + $0x8] ss:$12 sps:$4 sm:$0xff]   ;;  %v3901_v24 = vld [vmem:[%s4735_s2 + $0x20] ss:$12 sps:$4 sm:$0xff]   ;;  %v3921_v27 = vld [vmem:[%s4735_s2 + $0x78] ss:$12 sps:$4 sm:$0xff]  }
  0x69   : > { %2689 = vmatmul.mubr.msk.bf16.vlgmr.msra.gmra.mrb[0].mxu0 %vm491_vm1, %v3264_v13  ;;  %2899 = vmatpush3.bf16.msra.mxu1 %v3869_v19  ;;  %v3881_v21 = vld [vmem:[%s4735_s2 + $0x8] ss:$12 sps:$4 sm:$0xff]   ;;  %v3910_v25 = vld [vmem:[%s4735_s2 + $0x60] ss:$12 sps:$4 sm:$0xff]   ;;  %v3927_v28 = vld [vmem:[%s4735_s2 + $0x38] ss:$12 sps:$4 sm:$0xff]  }
  0x6a   : > { %708 = vmatpush1.bf16.msra.mxu0 %v3841_v14  ;;  %739 = vmatprep.mubr.bf16.mxu0 %v3635_v8  ;;  %v3888_v22 = vld [vmem:[%s4735_s2 + $0x48] ss:$12 sps:$4 sm:$0xff]   ;;  %v3939_v30 = vld [vmem:[%s4735_s2 + $0x50] ss:$12 sps:$4 sm:$0xff]   ;;  %v3951_v32 = vld [vmem:[%s4735_s2 + $0xac] ss:$12 sps:$4 sm:$0xff]  }
  0x6b   : > { %709 = vmatprep.subr.bf16.mxu0 %v3847_v15  ;;  %2904 = vmatprep.subr.bf16.mxu1 %v3636_v9  ;;  %v3932_v29 = vld [vmem:[%s4735_s2 + $0x94] ss:$12 sps:$4 sm:$0xff]   ;;  %v3945_v31 = vld [vmem:[%s4735_s2 + $0x90] ss:$12 sps:$4 sm:$0xff]   ;;  %v3983_v36 = vld [vmem:[%s4735_s2 + $0x98] ss:$12 sps:$4 sm:$0xff]  }
  0x6c   : > { %2901 = vmatmul.mubr.msk.bf16.vlgmr.msra.gmra.mrb[0].mxu1 %vm491_vm1, %v3264_v13  ;;  %v3958_v33 = vld [vmem:[%s4735_s2 + $0x68] ss:$12 sps:$4 sm:$0xff]   ;;  %v3974_v35 = vld [vmem:[%s4735_s2 + $0x80] ss:$12 sps:$4 sm:$0xff]   ;;  %v3994_v37 = vld [vmem:[%s4735_s2 + $0xb0] ss:$12 sps:$4 sm:$0xff]  }
  0x6d   : > { %2905 = vmatpush3.bf16.msra.mxu1 %v3881_v21  ;;  %2920 = vmatprep.mubr.msk.bf16.mxu1 %vm3637_vm0, %v3636_v9  ;;  %v3964_v34 = vld [vmem:[%s4735_s2 + $0xa8] ss:$12 sps:$4 sm:$0xff]   ;;  %v456_v44 = vshrl.u32 %v455_v43, 7  ;;  %v448_v47 = vld [vmem:[%s4736_s3] sm:$0x7]  ;;  %s2569_s21 = scalar_lea.sflag [#allocation5], %s3809_s11 }
  0x6e   : > { %710 = vmatpush1.bf16.msra.mxu0 %v3854_v16  ;;  %2906 = vmatprep.subr.bf16.mxu1 %v3636_v9  ;;  %v3296_v38 = vld [vmem:[%s3812_s15 + $0x8] sm:$0xff]   ;;  %v4052_v50 = vld [vmem:[%s4737_s4] ss:$0 sm:$0xff]  ;;  %v4060_v57 = vld [vmem:[%s4737_s4 + $0x1] ss:$0 sm:$0xff]  ;;  %p4759_p3 = scmp.ne.s32.totalorder %s4749_s12, 0 }
  0x6f   : > { %711 = vmatprep.subr.bf16.mxu0 %v3861_v17  ;;  %v457_v45 = vsub.s32 0, %v456_v44  ;;  %v461_v46 = vsub.s32 1, %v456_v44  ;;  %v465_v43 = vsub.s32 2, %v456_v44  ;;  %s3638_s22 = smov [#allocation8]  }
  0x70   : > { %s3561_s23 = sshll.u32 %s3638_s22, 4  ;;  %s3562_s23 = int_to_ptr.vmem [resolvable:$false] %s3561_s23 }
  0x71   : > { %2907 = vmatpush3.bf16.msra.mxu1 %v3901_v24  ;;  %v4045_v48 = vrot.slane %v448_v47, %v457_v45  ;;  %v4047_v49 = vrot.slane %v448_v47, %v461_v46  ;;  %v4070_v46 = vld [vmem:[%s4737_s4 + $0x2] ss:$0 sm:$0xff]  ;;  %s3563_s29 = scalar_lea.vmem %s3562_s23, 512 }
  0x72   : > { %712 = vmatpush1.bf16.msra.mxu0 %v3866_v18  ;;  %2908 = vmatprep.subr.bf16.mxu1 %v3636_v9 }
  0x73   : > { %713 = vmatprep.subr.bf16.mxu0 %v3875_v20 }
  0x75   : > { %2909 = vmatpush3.bf16.msra.mxu1 %v3927_v28 }
  0x76   : > { %714 = vmatpush1.bf16.msra.mxu0 %v3888_v22  ;;  %2910 = vmatprep.subr.bf16.mxu1 %v3636_v9 }
  0x77   : > { %715 = vmatprep.subr.bf16.mxu0 %v3894_v23 }
  0x79   : > { %2911 = vmatpush3.bf16.msra.mxu1 %v3939_v30 }
  0x7a   : > { %716 = vmatpush1.bf16.msra.mxu0 %v3910_v25  ;;  %2912 = vmatprep.subr.bf16.mxu1 %v3636_v9 }
  0x7b   : > { %717 = vmatprep.subr.bf16.mxu0 %v3916_v26 }
  0x7d   : > { %2913 = vmatpush3.bf16.msra.mxu1 %v3958_v33 }
  0x7e   : > { %718 = vmatpush1.bf16.msra.mxu0 %v3921_v27  ;;  %2914 = vmatprep.subr.bf16.mxu1 %v3636_v9 }
  0x7f   : > { %719 = vmatprep.subr.bf16.mxu0 %v3932_v29 }
  0x81   : > { %2915 = vmatpush3.bf16.msra.mxu1 %v3974_v35 }
  0x82   : > { %720 = vmatpush1.bf16.msra.mxu0 %v3945_v31  ;;  %2916 = vmatprep.subr.bf16.mxu1 %v3636_v9 }
  0x83   : > { %721 = vmatprep.subr.bf16.mxu0 %v3951_v32 }
  0x85   : > { %2917 = vmatpush3.bf16.msra.mxu1 %v3983_v36 }
  0x86   : > { %722 = vmatpush1.bf16.msra.mxu0 %v3964_v34  ;;  %2918 = vmatprep.subr.bf16.mxu1 %v3636_v9 }
  0x87   : > { %953 = vmatprep.subr.bf16.mxu0 %v3834_v12 }
  0x89   : > { %740 = vmatmul.mubr.bf16.vlgmr.msra.gmra.mrb[0].mxu0 %v3635_v8  ;;  %2919 = vmatpush3.bf16.msra.mxu1 %v3994_v37 }
  0x8a   : > { %954 = vmatpush1.bf16.msra.mxu0 %v3841_v14  ;;  %985 = vmatprep.mubr.bf16.mxu0 %v3635_v8 }
  0x8b   : > { %955 = vmatprep.subr.bf16.mxu0 %v3847_v15  ;;  %868 = vmatprep.subr.bf16.mxu1 %v3826_v10 }
  0x8c   : > { %2921 = vmatmul.mubr.bf16.vlgmr.msra.gmra.mrb[4].mxu1 %v3635_v8 }
  0x8d   : > { %869 = vmatpush1.bf16.msra.mxu1 %v3828_v11  ;;  %900 = vmatprep.mubr.bf16.mxu1 %v3635_v8 }
  0x8e   : > { %956 = vmatpush1.bf16.msra.mxu0 %v3854_v16  ;;  %2924 = vmatprep.subr.bf16.mxu1 %v3636_v9 }
  0x8f   : > { %957 = vmatprep.subr.bf16.mxu0 %v3861_v17 }
  0x92   : > { %958 = vmatpush1.bf16.msra.mxu0 %v3866_v18 }
  0x93   : > { %959 = vmatprep.subr.bf16.mxu0 %v3875_v20 }
  0x94   : > { %2725 = vmatmul.mubr.msk.bf16.vlgmr.msra.gmra.mrb[8].mxu1 %vm491_vm1, %v3296_v38 }
  0x95   : > { %2925 = vmatpush3.bf16.msra.mxu1 %v3869_v19  ;;  %2926 = vmatprep.mubr.msk.bf16.mxu1 %vm3637_vm0, %v3636_v9 }
  0x96   : > { %960 = vmatpush1.bf16.msra.mxu0 %v3888_v22  ;;  %2930 = vmatprep.subr.bf16.mxu1 %v3636_v9 }
  0x97   : > { %961 = vmatprep.subr.bf16.mxu0 %v3894_v23 }
  0x9a   : > { %962 = vmatpush1.bf16.msra.mxu0 %v3910_v25 }
  0x9b   : > { %963 = vmatprep.subr.bf16.mxu0 %v3916_v26 }
  0x9c   : > { %2927 = vmatmul.mubr.msk.bf16.vlgmr.msra.gmra.mrb[12].mxu1 %vm491_vm1, %v3296_v38 }
  0x9d   : > { %2931 = vmatpush3.bf16.msra.mxu1 %v3881_v21  ;;  %2946 = vmatprep.mubr.msk.bf16.mxu1 %vm3637_vm0, %v3636_v9 }
  0x9e   : > { %964 = vmatpush1.bf16.msra.mxu0 %v3921_v27  ;;  %2932 = vmatprep.subr.bf16.mxu1 %v3636_v9 }
  0x9f   : > { %965 = vmatprep.subr.bf16.mxu0 %v3932_v29 }
  0xa1   : > { %2933 = vmatpush3.bf16.msra.mxu1 %v3901_v24 }
  0xa2   : > { %966 = vmatpush1.bf16.msra.mxu0 %v3945_v31  ;;  %2934 = vmatprep.subr.bf16.mxu1 %v3636_v9 }
  0xa3   : > { %967 = vmatprep.subr.bf16.mxu0 %v3951_v32 }
  0xa5   : > { %2935 = vmatpush3.bf16.msra.mxu1 %v3927_v28 }
  0xa6   : > { %968 = vmatpush1.bf16.msra.mxu0 %v3964_v34  ;;  %2936 = vmatprep.subr.bf16.mxu1 %v3636_v9 }
  0xa7   : > { %1181 = vmatprep.subr.bf16.mxu0 %v3834_v12 }
  0xa9   : > { %2937 = vmatpush3.bf16.msra.mxu1 %v3939_v30 }
  0xaa   : > { %2938 = vmatprep.subr.bf16.mxu1 %v3636_v9 }
  0xad   : > { %2939 = vmatpush3.bf16.msra.mxu1 %v3958_v33 }
  0xae   : > { %2940 = vmatprep.subr.bf16.mxu1 %v3636_v9 }
  0xb1   : > { %2941 = vmatpush3.bf16.msra.mxu1 %v3974_v35 }
  0xb2   : > { %2942 = vmatprep.subr.bf16.mxu1 %v3636_v9 }
  0xb5   : > { %2943 = vmatpush3.bf16.msra.mxu1 %v3983_v36 }
  0xb6   : > { %2944 = vmatprep.subr.bf16.mxu1 %v3636_v9 }
  0xb9   : > { %2945 = vmatpush3.bf16.msra.mxu1 %v3994_v37 }
  0xba   : > { %1096 = vmatprep.subr.bf16.mxu1 %v3826_v10 }
 0x13f   : > { %v572_v39 = vpop.f32.mrb[0].mxu1 }
 0x140   : > { %v2902_v40 = vpop.f32.mrb[1].mxu1 }
 0x141   : > { %v575_v41 = vpop.f32.mrb[2].mxu1 }
 0x142   : > { %v2903_v42 = vpop.f32.mrb[3].mxu1 }
 0x15c   : > { %v741_v51 = vpop.f32.mrb[0].mxu0 }
 0x15d   : > { %v3126_v52 = vadd.f32 %v741_v51, %v4045_v48  ;;  %v743_v53 = vpop.f32.mrb[1].mxu0 }
 0x15e   : > { %v3127_v54 = vadd.f32 %v743_v53, %v4047_v49  ;;  %v745_v55 = vpop.f32.mrb[2].mxu0 }
 0x15f   : > { %v799_v56 = vadd.f32 %v3126_v52, %v4052_v50  ;;  %v3128_v58 = vadd.f32 %v745_v55, %v4045_v48  ;;  %v747_v59 = vpop.f32.mrb[3].mxu0  ;;  %v784_v3 = vpop.f32.mrb[4].mxu1  ;;  %v4072_v52 = vrot.slane %v448_v47, %v465_v43 }
 0x160   : > { %v3129_v60 = vadd.f32 %v747_v59, %v4047_v49  ;;  %v821_v63 = vadd.f32 %v3127_v54, %v4060_v57  ;;  %v2922_v4 = vpop.f32.mrb[5].mxu1  ;;  %v841_v54 = vadd.f32 %v4070_v46, %v784_v3 }
 0x161   : > { %v2716_v61 = vmul.f32 -1.442695, %v799_v56  ;;  %v800_v62 = vadd.f32 %v3128_v58, %v4052_v50  ;;  %v787_v6 = vpop.f32.mrb[6].mxu1  ;;  %v573_v58 = vadd.f32 %v572_v39, %v4072_v52 }
 0x162   : > { %v822_v1 = vadd.f32 %v3129_v60, %v4060_v57  ;;  %v2719_v2 = vmul.f32 -1.442695, %v821_v63  ;;  %v2923_v7 = vpop.f32.mrb[7].mxu1  ;;  %v842_v44 = vadd.f32 %v4070_v46, %v787_v6 }
 0x163   : > { %3311 = vpow2.f32 %v2716_v61  ;;  %v2717_v0 = vmul.f32 -1.442695, %v800_v62  ;;  %v576_v61 = vadd.f32 %v575_v41, %v4072_v52 }
 0x164   : > { %v2720_v5 = vmul.f32 -1.442695, %v822_v1 }
 0x165   : > { %3313 = vpow2.f32 %v2717_v0 }
 0x166   : > { %3315 = vpow2.f32 %v2719_v2 }
 0x167   : > { %3317 = vpow2.f32 %v2720_v5 }
 0x16d   : > { %v3312_v13 = vpop.eup %3311 }
 0x16e   : > { %v807_v38 = vadd.f32 1.0, %v3312_v13 }
 0x16f   : > { %v3314_v40 = vpop.eup %3313 }
 0x170   : > { %3319 = vrcp.f32 %v807_v38  ;;  %v808_v42 = vadd.f32 1.0, %v3314_v40  ;;  %v3316_v45 = vpop.eup %3315 }
 0x171   : > { %v3318_v51 = vpop.eup %3317  ;;  %v829_v53 = vadd.f32 1.0, %v3316_v45 }
 0x172   : > { %3321 = vrcp.f32 %v808_v42  ;;  %v830_v55 = vadd.f32 1.0, %v3318_v51  ;;  %v902_v42 = vpop.f32.mrb[8].mxu1 }
 0x173   : > { %3323 = vrcp.f32 %v829_v53  ;;  %v904_v43 = vpop.f32.mrb[9].mxu1 }
 0x174   : > { %3325 = vrcp.f32 %v830_v55  ;;  %v906_v45 = vpop.f32.mrb[10].mxu1 }
 0x175   : > { %v908_v51 = vpop.f32.mrb[11].mxu1 }
 0x176   : > { %v4104_v53 = vpop.f32.mrb[12].mxu1 }
 0x17a   : > { %v3320_v56 = vpop.eup %3319 }
 0x17b   : > { %v843_v59 = vmul.f32 %v3320_v56, %v841_v54  ;;  %v2928_v54 = vpop.f32.mrb[13].mxu1 }
 0x17c   : > { %v3322_v60 = vpop.eup %3321  ;;  %v4106_v55 = vpop.f32.mrb[14].mxu1 }
 0x17d   : > { %v845_v62 = vadd.f32 %v843_v59, %v573_v58  ;;  %v844_v63 = vmul.f32 %v3322_v60, %v842_v44  ;;  %v3324_v0 = vpop.eup %3323  ;;  %v2929_v56 = vpop.f32.mrb[15].mxu1  ;;  %v3297_v58 = vld [vmem:[%s3812_s15 + $0x10] sm:$0xff]   ;;  %v903_v59 = vadd.f32 %v902_v42, %v4045_v48  ;;  %v905_v44 = vadd.f32 %v904_v43, %v4047_v49 }
 0x17e   : > { %v3326_v1 = vpop.eup %3325  ;;  %v849_v2 = vsub.f32 1.0, %v3324_v0  ;;  %v853_v39 = vmul.f32 0.0, %v3324_v0 }
 0x17f   : > { %3327 = vtanh.f32 %v845_v62  ;;  %v846_v47 = vadd.f32 %v844_v63, %v576_v61  ;;  %v850_v4 = vsub.f32 1.0, %v3326_v1  ;;  %v854_v38 = vmul.f32 0.0, %v3326_v1 }
 0x180   : > { %v907_v62 = vadd.f32 %v906_v45, %v4045_v48  ;;  %v909_v1 = vadd.f32 %v908_v51, %v4047_v49 }
 0x181   : > { %3329 = vtanh.f32 %v846_v47 }
 0x189   : > { %v3328_v3 = vpop.eup %3327 }
 0x18a   : > { %v851_v5 = vmul.f32 %v3328_v3, %v849_v2 }
 0x18b   : > { %v3330_v7 = vpop.eup %3329 }
 0x18c   : > { %v852_v13 = vmul.f32 %v3330_v7, %v850_v4  ;;  %v4078_v6 = vadd.f32 %v853_v39, %v851_v5 }
 0x18e   : > { %v4080_v40 = vadd.f32 %v854_v38, %v852_v13 }
 0x190   : > { %v952_v41 = vpack.c.bf16 %v4080_v40, %v4078_v6 }
 0x192   : > { %986 = vmatmul.mubr.bf16.vlgmr.msra.gmra.mrb[4].mxu0 %v952_v41  ;;  %2947 = vmatmul.mubr.bf16.vlgmr.msra.gmra.mrb[16].mxu1 %v952_v41 }
 0x193   : > { %1097 = vmatpush1.bf16.msra.mxu1 %v3828_v11  ;;  %1128 = vmatprep.mubr.bf16.mxu1 %v3635_v8 }
 0x194   : > { %2950 = vmatprep.subr.bf16.mxu1 %v3636_v9  ;;  %1182 = vmatpush1.bf16.msra.mxu0 %v3841_v14 }
 0x195   : > { %1183 = vmatprep.subr.bf16.mxu0 %v3847_v15  ;;  %1213 = vmatprep.mubr.bf16.mxu0 %v3635_v8 }
 0x198   : > { %1184 = vmatpush1.bf16.msra.mxu0 %v3854_v16 }
 0x199   : > { %1185 = vmatprep.subr.bf16.mxu0 %v3861_v17 }
 0x19a   : > { %2734 = vmatmul.mubr.msk.bf16.vlgmr.msra.gmra.mrb[20].mxu1 %vm491_vm1, %v3297_v58 }
 0x19b   : > { %2951 = vmatpush3.bf16.msra.mxu1 %v3869_v19  ;;  %2952 = vmatprep.mubr.msk.bf16.mxu1 %vm3637_vm0, %v3636_v9 }
 0x19c   : > { %1186 = vmatpush1.bf16.msra.mxu0 %v3866_v18  ;;  %2956 = vmatprep.subr.bf16.mxu1 %v3636_v9 }
 0x19d   : > { %1187 = vmatprep.subr.bf16.mxu0 %v3875_v20 }
 0x1a0   : > { %1188 = vmatpush1.bf16.msra.mxu0 %v3888_v22 }
 0x1a1   : > { %1189 = vmatprep.subr.bf16.mxu0 %v3894_v23 }
 0x1a2   : > { %2953 = vmatmul.mubr.msk.bf16.vlgmr.msra.gmra.mrb[24].mxu1 %vm491_vm1, %v3297_v58 }
 0x1a3   : > { %2957 = vmatpush3.bf16.msra.mxu1 %v3881_v21  ;;  %2972 = vmatprep.mubr.msk.bf16.mxu1 %vm3637_vm0, %v3636_v9 }
 0x1a4   : > { %1190 = vmatpush1.bf16.msra.mxu0 %v3910_v25  ;;  %2958 = vmatprep.subr.bf16.mxu1 %v3636_v9 }
 0x1a5   : > { %1191 = vmatprep.subr.bf16.mxu0 %v3916_v26 }
 0x1a7   : > { %2959 = vmatpush3.bf16.msra.mxu1 %v3901_v24 }
 0x1a8   : > { %1192 = vmatpush1.bf16.msra.mxu0 %v3921_v27  ;;  %2960 = vmatprep.subr.bf16.mxu1 %v3636_v9 }
 0x1a9   : > { %1193 = vmatprep.subr.bf16.mxu0 %v3932_v29 }
 0x1ab   : > { %2961 = vmatpush3.bf16.msra.mxu1 %v3927_v28 }
 0x1ac   : > { %1194 = vmatpush1.bf16.msra.mxu0 %v3945_v31  ;;  %2962 = vmatprep.subr.bf16.mxu1 %v3636_v9 }
 0x1ad   : > { %1195 = vmatprep.subr.bf16.mxu0 %v3951_v32 }
 0x1af   : > { %2963 = vmatpush3.bf16.msra.mxu1 %v3939_v30 }
 0x1b0   : > { %1196 = vmatpush1.bf16.msra.mxu0 %v3964_v34  ;;  %2964 = vmatprep.subr.bf16.mxu1 %v3636_v9 }
 0x1b1   : > { %1324 = vmatprep.subr.bf16.mxu0 %v3826_v10 }
 0x1b3   : > { %2965 = vmatpush3.bf16.msra.mxu1 %v3958_v33 }
 0x1b4   : > { %2966 = vmatprep.subr.bf16.mxu1 %v3636_v9 }
 0x1b7   : > { %2967 = vmatpush3.bf16.msra.mxu1 %v3974_v35 }
 0x1b8   : > { %2968 = vmatprep.subr.bf16.mxu1 %v3636_v9 }
 0x1bb   : > { %2969 = vmatpush3.bf16.msra.mxu1 %v3983_v36 }
 0x1bc   : > { %2970 = vmatprep.subr.bf16.mxu1 %v3636_v9 }
 0x1bf   : > { %2971 = vmatpush3.bf16.msra.mxu1 %v3994_v37 }
 0x1c0   : > { %2976 = vmatprep.subr.bf16.mxu1 %v3636_v9 }
 0x265   : > { %v987_v60 = vpop.f32.mrb[4].mxu0  ;;  %v1030_v61 = vpop.f32.mrb[16].mxu1 }
 0x266   : > { %v1037_v63 = vadd.f32 %v987_v60, %v903_v59  ;;  %v989_v47 = vpop.f32.mrb[5].mxu0  ;;  %v2948_v0 = vpop.f32.mrb[17].mxu1 }
 0x267   : > { %v1053_v2 = vadd.f32 %v989_v47, %v905_v44  ;;  %v991_v3 = vpop.f32.mrb[6].mxu0  ;;  %v1033_v4 = vpop.f32.mrb[18].mxu1  ;;  %v1069_v0 = vadd.f32 %v4070_v46, %v1030_v61 }
 0x268   : > { %v1039_v5 = vadd.f32 %v4052_v50, %v1037_v63  ;;  %v1038_v39 = vadd.f32 %v991_v3, %v907_v62  ;;  %v993_v7 = vpop.f32.mrb[7].mxu0  ;;  %v2949_v13 = vpop.f32.mrb[19].mxu1  ;;  %v946_v3 = vadd.f32 %v4104_v53, %v4072_v52 }
 0x269   : > { %v1054_v38 = vadd.f32 %v993_v7, %v909_v1  ;;  %v1055_v43 = vadd.f32 %v4060_v57, %v1053_v2  ;;  %v949_v13 = vadd.f32 %v4106_v55, %v4072_v52 }
 0x26a   : > { %v2727_v41 = vmul.f32 -1.442695, %v1039_v5  ;;  %v1040_v42 = vadd.f32 %v4052_v50, %v1038_v39  ;;  %v1070_v39 = vadd.f32 %v4070_v46, %v1033_v4 }
 0x26b   : > { %v1056_v54 = vadd.f32 %v4060_v57, %v1054_v38  ;;  %v2729_v51 = vmul.f32 -1.442695, %v1055_v43 }
 0x26c   : > { %3331 = vpow2.f32 %v2727_v41  ;;  %v2728_v45 = vmul.f32 -1.442695, %v1040_v42 }
 0x26d   : > { %v2730_v56 = vmul.f32 -1.442695, %v1056_v54 }
 0x26e   : > { %3333 = vpow2.f32 %v2728_v45 }
 0x26f   : > { %3335 = vpow2.f32 %v2729_v51 }
 0x270   : > { %3337 = vpow2.f32 %v2730_v56 }
 0x276   : > { %v3332_v58 = vpop.eup %3331 }
 0x277   : > { %v1047_v59 = vadd.f32 1.0, %v3332_v58 }
 0x278   : > { %v3334_v44 = vpop.eup %3333 }
 0x279   : > { %3339 = vrcp.f32 %v1047_v59  ;;  %v1048_v60 = vadd.f32 1.0, %v3334_v44  ;;  %v3336_v62 = vpop.eup %3335 }
 0x27a   : > { %v3338_v63 = vpop.eup %3337  ;;  %v1063_v47 = vadd.f32 1.0, %v3336_v62 }
 0x27b   : > { %3341 = vrcp.f32 %v1048_v60  ;;  %v1064_v1 = vadd.f32 1.0, %v3338_v63 }
 0x27c   : > { %3343 = vrcp.f32 %v1063_v47 }
 0x27d   : > { %3345 = vrcp.f32 %v1064_v1 }
 0x283   : > { %v3340_v2 = vpop.eup %3339 }
 0x284   : > { %v1071_v5 = vmul.f32 %v3340_v2, %v1069_v0 }
 0x285   : > { %v3342_v7 = vpop.eup %3341 }
 0x286   : > { %v1073_v38 = vadd.f32 %v1071_v5, %v946_v3  ;;  %v1072_v41 = vmul.f32 %v3342_v7, %v1070_v39  ;;  %v3344_v61 = vpop.eup %3343  ;;  %v3298_v3 = vld [vmem:[%s3812_s15 + $0x18] sm:$0xff]  }
 0x287   : > { %v3346_v43 = vpop.eup %3345  ;;  %v1077_v45 = vsub.f32 1.0, %v3344_v61  ;;  %v1081_v56 = vmul.f32 %v3344_v61, %v4078_v6  ;;  %v1130_v6 = vpop.f32.mrb[20].mxu1 }
 0x288   : > { %3347 = vtanh.f32 %v1073_v38  ;;  %v1074_v42 = vadd.f32 %v1072_v41, %v949_v13  ;;  %v1078_v51 = vsub.f32 1.0, %v3346_v43  ;;  %v1082_v59 = vmul.f32 %v3346_v43, %v4080_v40  ;;  %v1132_v40 = vpop.f32.mrb[21].mxu1 }
 0x289   : > { %v1134_v62 = vpop.f32.mrb[22].mxu1  ;;  %v1131_v5 = vadd.f32 %v1130_v6, %v4045_v48  ;;  %v1133_v39 = vadd.f32 %v1132_v40, %v4047_v49 }
 0x28a   : > { %3349 = vtanh.f32 %v1074_v42  ;;  %v1136_v63 = vpop.f32.mrb[23].mxu1  ;;  %v1135_v38 = vadd.f32 %v1134_v62, %v4045_v48 }
 0x28b   : > { %v4162_v47 = vpop.f32.mrb[24].mxu1  ;;  %v1137_v43 = vadd.f32 %v1136_v63, %v4047_v49 }
 0x28c   : > { %v2954_v0 = vpop.f32.mrb[25].mxu1 }
 0x28d   : > { %v4164_v1 = vpop.f32.mrb[26].mxu1 }
 0x28e   : > { %v2955_v2 = vpop.f32.mrb[27].mxu1 }
 0x292   : > { %v3348_v54 = vpop.eup %3347 }
 0x293   : > { %v1079_v53 = vmul.f32 %v3348_v54, %v1077_v45 }
 0x294   : > { %v3350_v58 = vpop.eup %3349 }
 0x295   : > { %v1080_v4 = vmul.f32 %v3350_v58, %v1078_v51  ;;  %v4149_v44 = vadd.f32 %v1081_v56, %v1079_v53 }
 0x297   : > { %v4151_v55 = vadd.f32 %v1082_v59, %v1080_v4 }
 0x299   : > { %v1180_v60 = vpack.c.bf16 %v4151_v55, %v4149_v44 }
 0x29b   : > { %1214 = vmatmul.mubr.bf16.vlgmr.msra.gmra.mrb[8].mxu0 %v1180_v60  ;;  %2973 = vmatmul.mubr.bf16.vlgmr.msra.gmra.mrb[28].mxu1 %v1180_v60 }
 0x29c   : > { %1325 = vmatpush1.bf16.msra.mxu0 %v3828_v11  ;;  %2977 = vmatpush3.bf16.msra.mxu1 %v3869_v19 }
 0x29d   : > { %1356 = vmatprep.mubr.bf16.mxu0 %v3635_v8  ;;  %2978 = vmatprep.mubr.msk.bf16.mxu1 %vm3637_vm0, %v3636_v9 }
 0x29e   : > { %1409 = vmatprep.subr.bf16.mxu0 %v3834_v12  ;;  %2982 = vmatprep.subr.bf16.mxu1 %v3636_v9 }
 0x2a3   : > { %2743 = vmatmul.mubr.msk.bf16.vlgmr.msra.gmra.mrb[12].mxu0 %vm491_vm1, %v3298_v3  ;;  %2979 = vmatmul.mubr.msk.bf16.vlgmr.msra.gmra.mrb[32].mxu1 %vm491_vm1, %v3298_v3 }
 0x2a4   : > { %1410 = vmatpush1.bf16.msra.mxu0 %v3841_v14  ;;  %2983 = vmatpush3.bf16.msra.mxu1 %v3881_v21 }
 0x2a5   : > { %1411 = vmatprep.subr.bf16.mxu0 %v3847_v15  ;;  %2984 = vmatprep.subr.bf16.mxu1 %v3636_v9 }
 0x2a6   : > { %1441 = vmatprep.mubr.bf16.mxu0 %v3635_v8  ;;  %2998 = vmatprep.mubr.msk.bf16.mxu1 %vm3637_vm0, %v3636_v9 }
 0x2a8   : > { %1412 = vmatpush1.bf16.msra.mxu0 %v3854_v16  ;;  %2985 = vmatpush3.bf16.msra.mxu1 %v3901_v24 }
 0x2a9   : > { %1413 = vmatprep.subr.bf16.mxu0 %v3861_v17  ;;  %2986 = vmatprep.subr.bf16.mxu1 %v3636_v9 }
 0x2ac   : > { %1414 = vmatpush1.bf16.msra.mxu0 %v3866_v18  ;;  %2987 = vmatpush3.bf16.msra.mxu1 %v3927_v28 }
 0x2ad   : > { %1415 = vmatprep.subr.bf16.mxu0 %v3875_v20  ;;  %2988 = vmatprep.subr.bf16.mxu1 %v3636_v9 }
 0x2b0   : > { %1416 = vmatpush1.bf16.msra.mxu0 %v3888_v22  ;;  %2989 = vmatpush3.bf16.msra.mxu1 %v3939_v30 }
 0x2b1   : > { %1417 = vmatprep.subr.bf16.mxu0 %v3894_v23  ;;  %2990 = vmatprep.subr.bf16.mxu1 %v3636_v9 }
 0x2b4   : > { %1418 = vmatpush1.bf16.msra.mxu0 %v3910_v25  ;;  %2991 = vmatpush3.bf16.msra.mxu1 %v3958_v33 }
 0x2b5   : > { %1419 = vmatprep.subr.bf16.mxu0 %v3916_v26  ;;  %2992 = vmatprep.subr.bf16.mxu1 %v3636_v9 }
 0x2b8   : > { %1420 = vmatpush1.bf16.msra.mxu0 %v3921_v27  ;;  %2993 = vmatpush3.bf16.msra.mxu1 %v3974_v35 }
 0x2b9   : > { %1421 = vmatprep.subr.bf16.mxu0 %v3932_v29  ;;  %2994 = vmatprep.subr.bf16.mxu1 %v3636_v9 }
 0x2bc   : > { %1422 = vmatpush1.bf16.msra.mxu0 %v3945_v31  ;;  %2995 = vmatpush3.bf16.msra.mxu1 %v3983_v36 }
 0x2bd   : > { %1423 = vmatprep.subr.bf16.mxu0 %v3951_v32  ;;  %2996 = vmatprep.subr.bf16.mxu1 %v3636_v9 }
 0x2c0   : > { %1424 = vmatpush1.bf16.msra.mxu0 %v3964_v34  ;;  %2997 = vmatpush3.bf16.msra.mxu1 %v3994_v37 }
 0x2c1   : > { %1552 = vmatprep.subr.bf16.mxu0 %v3826_v10  ;;  %3002 = vmatprep.subr.bf16.mxu1 %v3636_v9 }
 0x36e   : > { %v1215_v7 = vpop.f32.mrb[8].mxu0  ;;  %v1258_v13 = vpop.f32.mrb[28].mxu1 }
 0x36f   : > { %v1265_v41 = vadd.f32 %v1215_v7, %v1131_v5  ;;  %v1217_v42 = vpop.f32.mrb[9].mxu0  ;;  %v2974_v61 = vpop.f32.mrb[29].mxu1 }
 0x370   : > { %v1281_v45 = vadd.f32 %v1217_v42, %v1133_v39  ;;  %v1219_v54 = vpop.f32.mrb[10].mxu0  ;;  %v1261_v51 = vpop.f32.mrb[30].mxu1  ;;  %v1297_v42 = vadd.f32 %v4070_v46, %v1258_v13 }
 0x371   : > { %v1267_v10 = vadd.f32 %v4052_v50, %v1265_v41  ;;  %v1266_v53 = vadd.f32 %v1219_v54, %v1135_v38  ;;  %v1221_v56 = vpop.f32.mrb[11].mxu0  ;;  %v2975_v58 = vpop.f32.mrb[31].mxu1 }
 0x372   : > { %v1282_v4 = vadd.f32 %v1221_v56, %v1137_v43  ;;  %v1283_v6 = vadd.f32 %v4060_v57, %v1281_v45  ;;  %v1174_v45 = vadd.f32 %v4162_v47, %v4072_v52  ;;  %v1177_v56 = vadd.f32 %v4164_v1, %v4072_v52 }
 0x373   : > { %v2736_v59 = vmul.f32 -1.442695, %v1267_v10  ;;  %v1268_v60 = vadd.f32 %v4052_v50, %v1266_v53  ;;  %v1298_v10 = vadd.f32 %v4070_v46, %v1261_v51 }
 0x374   : > { %v1284_v62 = vadd.f32 %v4060_v57, %v1282_v4  ;;  %v2738_v63 = vmul.f32 -1.442695, %v1283_v6 }
 0x375   : > { %3351 = vpow2.f32 %v2736_v59  ;;  %v2737_v40 = vmul.f32 -1.442695, %v1268_v60 }
 0x376   : > { %v2739_v0 = vmul.f32 -1.442695, %v1284_v62 }
 0x377   : > { %3353 = vpow2.f32 %v2737_v40 }
 0x378   : > { %3355 = vpow2.f32 %v2738_v63 }
 0x379   : > { %3357 = vpow2.f32 %v2739_v0 }
 0x37f   : > { %v3352_v2 = vpop.eup %3351 }
 0x380   : > { %v1275_v3 = vadd.f32 1.0, %v3352_v2 }
 0x381   : > { %v3354_v5 = vpop.eup %3353 }
 0x382   : > { %3359 = vrcp.f32 %v1275_v3  ;;  %v1276_v39 = vadd.f32 1.0, %v3354_v5  ;;  %v3356_v7 = vpop.eup %3355 }
 0x383   : > { %v3358_v38 = vpop.eup %3357  ;;  %v1291_v41 = vadd.f32 1.0, %v3356_v7 }
 0x384   : > { %3361 = vrcp.f32 %v1276_v39  ;;  %v1292_v61 = vadd.f32 1.0, %v3358_v38  ;;  %v3299_v38 = vld [vmem:[%s3812_s15 + $0x20] sm:$0xff]  }
 0x385   : > { %3363 = vrcp.f32 %v1291_v41 }
 0x386   : > { %3365 = vrcp.f32 %v1292_v61 }
 0x38c   : > { %v3360_v43 = vpop.eup %3359 }
 0x38d   : > { %v1299_v54 = vmul.f32 %v3360_v43, %v1297_v42 }
 0x38e   : > { %v3362_v53 = vpop.eup %3361 }
 0x38f   : > { %v1301_v58 = vadd.f32 %v1299_v54, %v1174_v45  ;;  %v1300_v4 = vmul.f32 %v3362_v53, %v1298_v10  ;;  %v3364_v13 = vpop.eup %3363 }
 0x390   : > { %v3366_v60 = vpop.eup %3365  ;;  %v1305_v6 = vsub.f32 1.0, %v3364_v13  ;;  %v1309_v63 = vmul.f32 %v3364_v13, %v4149_v44  ;;  %v4233_v44 = vpop.f32.mrb[32].mxu1 }
 0x391   : > { %3367 = vtanh.f32 %v1301_v58  ;;  %v1302_v59 = vadd.f32 %v1300_v4, %v1177_v56  ;;  %v1306_v62 = vsub.f32 1.0, %v3366_v60  ;;  %v1310_v2 = vmul.f32 %v3366_v60, %v4151_v55  ;;  %v2980_v55 = vpop.f32.mrb[33].mxu1 }
 0x392   : > { %v4235_v39 = vpop.f32.mrb[34].mxu1  ;;  %v1402_v54 = vadd.f32 %v4233_v44, %v4072_v52 }
 0x393   : > { %3369 = vtanh.f32 %v1302_v59  ;;  %v2981_v7 = vpop.f32.mrb[35].mxu1  ;;  %v1405_v58 = vadd.f32 %v4235_v39, %v4072_v52 }
 0x394   : > { %v4299_v7 = vld [vmem:[#allocation3] ss:$12 sps:$4 sm:$0xff]  }
 0x39b   : > { %v3368_v40 = vpop.eup %3367 }
 0x39c   : > { %v1307_v47 = vmul.f32 %v3368_v40, %v1305_v6 }
 0x39d   : > { %v3370_v0 = vpop.eup %3369 }
 0x39e   : > { %v1308_v51 = vmul.f32 %v3370_v0, %v1306_v62  ;;  %v4220_v1 = vadd.f32 %v1309_v63, %v1307_v47 }
 0x3a0   : > { %v4222_v3 = vadd.f32 %v1310_v2, %v1308_v51 }
 0x3a2   : > { %v1408_v5 = vpack.c.bf16 %v4222_v3, %v4220_v1 }
 0x3a4   : > { %1442 = vmatmul.mubr.bf16.vlgmr.msra.gmra.mrb[12].mxu0 %v1408_v5  ;;  %2999 = vmatmul.mubr.bf16.vlgmr.msra.gmra.mrb[36].mxu1 %v1408_v5 }
 0x3a5   : > { %1553 = vmatpush1.bf16.msra.mxu0 %v3828_v11  ;;  %3003 = vmatpush3.bf16.msra.mxu1 %v3869_v19  ;;  %v4273_v11 = vld [vmem:[#allocation3 + $0x4] ss:$12 sps:$4 sm:$0xff]  }
 0x3a6   : > { %1584 = vmatprep.mubr.bf16.mxu0 %v3635_v8  ;;  %3004 = vmatprep.mubr.msk.bf16.mxu1 %vm3637_vm0, %v3636_v9 }
 0x3a7   : > { %1637 = vmatprep.subr.bf16.mxu0 %v3834_v12  ;;  %3008 = vmatprep.subr.bf16.mxu1 %v3636_v9 }
 0x3ac   : > { %2752 = vmatmul.mubr.msk.bf16.vlgmr.msra.gmra.mrb[16].mxu0 %vm491_vm1, %v3299_v38  ;;  %3005 = vmatmul.mubr.msk.bf16.vlgmr.msra.gmra.mrb[40].mxu1 %vm491_vm1, %v3299_v38  ;;  %v4302_v38 = vld [vmem:[#allocation3 + $0x8] ss:$12 sps:$4 sm:$0xff]  }
 0x3ad   : > { %1638 = vmatpush1.bf16.msra.mxu0 %v3841_v14  ;;  %3009 = vmatpush3.bf16.msra.mxu1 %v3881_v21 }
 0x3ae   : > { %1639 = vmatprep.subr.bf16.mxu0 %v3847_v15  ;;  %3010 = vmatprep.subr.bf16.mxu1 %v3636_v9 }
 0x3af   : > { %1669 = vmatprep.mubr.bf16.mxu0 %v3635_v8  ;;  %3024 = vmatprep.mubr.msk.bf16.mxu1 %vm3637_vm0, %v3636_v9 }
 0x3b1   : > { %1640 = vmatpush1.bf16.msra.mxu0 %v3854_v16  ;;  %3011 = vmatpush3.bf16.msra.mxu1 %v3901_v24 }
 0x3b2   : > { %1641 = vmatprep.subr.bf16.mxu0 %v3861_v17  ;;  %3012 = vmatprep.subr.bf16.mxu1 %v3636_v9 }
 0x3b5   : > { %1642 = vmatpush1.bf16.msra.mxu0 %v3866_v18  ;;  %3013 = vmatpush3.bf16.msra.mxu1 %v3927_v28 }
 0x3b6   : > { %1643 = vmatprep.subr.bf16.mxu0 %v3875_v20  ;;  %3014 = vmatprep.subr.bf16.mxu1 %v3636_v9 }
 0x3b9   : > { %1644 = vmatpush1.bf16.msra.mxu0 %v3888_v22  ;;  %3015 = vmatpush3.bf16.msra.mxu1 %v3939_v30 }
 0x3ba   : > { %1645 = vmatprep.subr.bf16.mxu0 %v3894_v23  ;;  %3016 = vmatprep.subr.bf16.mxu1 %v3636_v9 }
 0x3bd   : > { %1646 = vmatpush1.bf16.msra.mxu0 %v3910_v25  ;;  %3017 = vmatpush3.bf16.msra.mxu1 %v3958_v33 }
 0x3be   : > { %1647 = vmatprep.subr.bf16.mxu0 %v3916_v26  ;;  %3018 = vmatprep.subr.bf16.mxu1 %v3636_v9 }
 0x3c1   : > { %1648 = vmatpush1.bf16.msra.mxu0 %v3921_v27  ;;  %3019 = vmatpush3.bf16.msra.mxu1 %v3974_v35 }
 0x3c2   : > { %1649 = vmatprep.subr.bf16.mxu0 %v3932_v29  ;;  %3020 = vmatprep.subr.bf16.mxu1 %v3636_v9 }
 0x3c5   : > { %1650 = vmatpush1.bf16.msra.mxu0 %v3945_v31  ;;  %3021 = vmatpush3.bf16.msra.mxu1 %v3983_v36 }
 0x3c6   : > { %1651 = vmatprep.subr.bf16.mxu0 %v3951_v32  ;;  %3022 = vmatprep.subr.bf16.mxu1 %v3636_v9 }
 0x3c9   : > { %1652 = vmatpush1.bf16.msra.mxu0 %v3964_v34  ;;  %3023 = vmatpush3.bf16.msra.mxu1 %v3994_v37 }
 0x3ca   : > { %1780 = vmatprep.subr.bf16.mxu0 %v4273_v11  ;;  %3028 = vmatprep.subr.bf16.mxu1 %v3636_v9 }
 0x477   : > { %v1443_v12 = vpop.f32.mrb[12].mxu0  ;;  %v1486_v14 = vpop.f32.mrb[36].mxu1 }
 0x478   : > { %v3146_v15 = vadd.f32 %v1443_v12, %v4045_v48  ;;  %v1445_v16 = vpop.f32.mrb[13].mxu0  ;;  %v3000_v17 = vpop.f32.mrb[37].mxu1  ;;  %v1525_v61 = vadd.f32 %v4070_v46, %v1486_v14 }
 0x479   : > { %v3147_v18 = vadd.f32 %v1445_v16, %v4047_v49  ;;  %v1447_v19 = vpop.f32.mrb[14].mxu0  ;;  %v1489_v20 = vpop.f32.mrb[38].mxu1  ;;  %v3300_v16 = vld [vmem:[%s3812_s15 + $0x28] sm:$0xff]  }
 0x47a   : > { %v1495_v21 = vadd.f32 %v3146_v15, %v4052_v50  ;;  %v3148_v22 = vadd.f32 %v1447_v19, %v4045_v48  ;;  %v1449_v23 = vpop.f32.mrb[15].mxu0  ;;  %v3001_v24 = vpop.f32.mrb[39].mxu1  ;;  %v1526_v53 = vadd.f32 %v4070_v46, %v1489_v20  ;;  %v4325_v17 = vld [vmem:[%s4735_s2] ss:$12 sps:$4 sm:$0xff]   ;;  %v4337_v19 = vld [vmem:[%s4735_s2 + $0x1c] ss:$12 sps:$4 sm:$0xff]  }
 0x47b   : > { %v3149_v25 = vadd.f32 %v1449_v23, %v4047_v49  ;;  %v1511_v28 = vadd.f32 %v3147_v18, %v4060_v57  ;;  %v4331_v18 = vld [vmem:[%s4735_s2 + $0x8] ss:$12 sps:$4 sm:$0xff]   ;;  %v4347_v20 = vld [vmem:[%s4735_s2 + $0x18] ss:$12 sps:$4 sm:$0xff]   ;;  %v4366_v23 = vld [vmem:[%s4735_s2 + $0x30] ss:$12 sps:$4 sm:$0xff]  }
 0x47c   : > { %v2745_v26 = vmul.f32 -1.442695, %v1495_v21  ;;  %v1496_v27 = vadd.f32 %v3148_v22, %v4052_v50  ;;  %v4353_v21 = vld [vmem:[%s4735_s2 + $0x20] ss:$12 sps:$4 sm:$0xff]   ;;  %v4372_v24 = vld [vmem:[%s4735_s2 + $0x38] ss:$12 sps:$4 sm:$0xff]  }
 0x47d   : > { %v1512_v30 = vadd.f32 %v3149_v25, %v4060_v57  ;;  %v2747_v31 = vmul.f32 -1.442695, %v1511_v28  ;;  %v4359_v22 = vld [vmem:[%s4735_s2 + $0x34] ss:$12 sps:$4 sm:$0xff]   ;;  %v4378_v25 = vld [vmem:[%s4735_s2 + $0x4c] ss:$12 sps:$4 sm:$0xff]  }
 0x47e   : > { %3371 = vpow2.f32 %v2745_v26  ;;  %v2746_v29 = vmul.f32 -1.442695, %v1496_v27  ;;  %v4385_v26 = vld [vmem:[%s4735_s2 + $0x48] ss:$12 sps:$4 sm:$0xff]   ;;  %v4391_v27 = vld [vmem:[%s4735_s2 + $0x50] ss:$12 sps:$4 sm:$0xff]  }
 0x47f   : > { %v2748_v32 = vmul.f32 -1.442695, %v1512_v30  ;;  %v4397_v28 = vld [vmem:[%s4735_s2 + $0x64] ss:$12 sps:$4 sm:$0xff]   ;;  %v4410_v30 = vld [vmem:[%s4735_s2 + $0x68] ss:$12 sps:$4 sm:$0xff]  }
 0x480   : > { %3373 = vpow2.f32 %v2746_v29  ;;  %v4404_v29 = vld [vmem:[%s4735_s2 + $0x60] ss:$12 sps:$4 sm:$0xff]  }
 0x481   : > { %3375 = vpow2.f32 %v2747_v31  ;;  %v4416_v31 = vld [vmem:[%s4735_s2 + $0x7c] ss:$12 sps:$4 sm:$0xff]  }
 0x482   : > { %3377 = vpow2.f32 %v2748_v32  ;;  %v4423_v32 = vld [vmem:[%s4735_s2 + $0x78] ss:$12 sps:$4 sm:$0xff]  }
 0x488   : > { %v3372_v33 = vpop.eup %3371 }
 0x489   : > { %v1503_v34 = vadd.f32 1.0, %v3372_v33  ;;  %v4429_v33 = vld [vmem:[%s4735_s2 + $0x80] ss:$12 sps:$4 sm:$0xff]  }
 0x48a   : > { %v3374_v35 = vpop.eup %3373 }
 0x48b   : > { %3379 = vrcp.f32 %v1503_v34  ;;  %v1504_v36 = vadd.f32 1.0, %v3374_v35  ;;  %v3376_v37 = vpop.eup %3375  ;;  %v4435_v34 = vld [vmem:[%s4735_s2 + $0x94] ss:$12 sps:$4 sm:$0xff]   ;;  %v4442_v35 = vld [vmem:[%s4735_s2 + $0x90] ss:$12 sps:$4 sm:$0xff]  }
 0x48c   : > { %v3378_v41 = vpop.eup %3377  ;;  %v1519_v42 = vadd.f32 1.0, %v3376_v37  ;;  %v4454_v37 = vld [vmem:[%s4735_s2 + $0xac] ss:$12 sps:$4 sm:$0xff]  }
 0x48d   : > { %3381 = vrcp.f32 %v1504_v36  ;;  %v1520_v43 = vadd.f32 1.0, %v3378_v41  ;;  %v4448_v36 = vld [vmem:[%s4735_s2 + $0x98] ss:$12 sps:$4 sm:$0xff]   ;;  %v4461_v41 = vld [vmem:[%s4735_s2 + $0xa8] ss:$12 sps:$4 sm:$0xff]  }
 0x48e   : > { %3383 = vrcp.f32 %v1519_v42  ;;  %v4467_v42 = vld [vmem:[%s4735_s2 + $0xb0] ss:$12 sps:$4 sm:$0xff]  }
 0x48f   : > { %3385 = vrcp.f32 %v1520_v43 }
 0x495   : > { %v3380_v45 = vpop.eup %3379 }
 0x496   : > { %v1527_v10 = vmul.f32 %v3380_v45, %v1525_v61 }
 0x497   : > { %v3382_v56 = vpop.eup %3381 }
 0x498   : > { %v1529_v4 = vadd.f32 %v1527_v10, %v1402_v54  ;;  %v1528_v59 = vmul.f32 %v3382_v56, %v1526_v53  ;;  %v3384_v60 = vpop.eup %3383 }
 0x499   : > { %v3386_v6 = vpop.eup %3385  ;;  %v1533_v40 = vsub.f32 1.0, %v3384_v60  ;;  %v1537_v0 = vmul.f32 %v3384_v60, %v4220_v1  ;;  %v4311_v1 = vld [vmem:[%s4735_s2 + $0x4] ss:$12 sps:$4 sm:$0xff]  }
 0x49a   : > { %3387 = vtanh.f32 %v1529_v4  ;;  %v1530_v13 = vadd.f32 %v1528_v59, %v1405_v58  ;;  %v1534_v47 = vsub.f32 1.0, %v3386_v6  ;;  %v1538_v5 = vmul.f32 %v3386_v6, %v4222_v3  ;;  %v4315_v3 = vpop.f32.mrb[40].mxu1 }
 0x49b   : > { %v3006_v12 = vpop.f32.mrb[41].mxu1 }
 0x49c   : > { %3389 = vtanh.f32 %v1530_v13  ;;  %v4317_v14 = vpop.f32.mrb[42].mxu1 }
 0x49d   : > { %v3007_v15 = vpop.f32.mrb[43].mxu1 }
 0x4a4   : > { %v3388_v62 = vpop.eup %3387 }
 0x4a5   : > { %v1535_v63 = vmul.f32 %v3388_v62, %v1533_v40 }
 0x4a6   : > { %v3390_v51 = vpop.eup %3389 }
 0x4a7   : > { %v1536_v2 = vmul.f32 %v3390_v51, %v1534_v47  ;;  %v4293_v44 = vadd.f32 %v1537_v0, %v1535_v63 }
 0x4a9   : > { %v4295_v55 = vadd.f32 %v1538_v5, %v1536_v2 }
 0x4ab   : > { %v1636_v39 = vpack.c.bf16 %v4295_v55, %v4293_v44 }
 0x4ad   : > { %1670 = vmatmul.mubr.bf16.vlgmr.msra.gmra.mrb[16].mxu0 %v1636_v39  ;;  %3025 = vmatmul.mubr.bf16.vlgmr.msra.gmra.mrb[44].mxu1 %v1636_v39 }
 0x4ae   : > { %1781 = vmatpush1.bf16.msra.mxu0 %v4299_v7  ;;  %3029 = vmatpush3.bf16.msra.mxu1 %v4302_v38 }
 0x4af   : > { %1812 = vmatprep.mubr.bf16.mxu0 %v3635_v8  ;;  %3030 = vmatprep.mubr.msk.bf16.mxu1 %vm3637_vm0, %v3636_v9 }
 0x4b0   : > { %1865 = vmatprep.subr.bf16.mxu0 %v4311_v1  ;;  %3034 = vmatprep.subr.bf16.mxu1 %v3636_v9 }
 0x4b5   : > { %2761 = vmatmul.mubr.msk.bf16.vlgmr.msra.gmra.mrb[20].mxu0 %vm491_vm1, %v3300_v16  ;;  %3031 = vmatmul.mubr.msk.bf16.vlgmr.msra.gmra.mrb[48].mxu1 %vm491_vm1, %v3300_v16 }
 0x4b6   : > { %1866 = vmatpush1.bf16.msra.mxu0 %v4325_v17  ;;  %3035 = vmatpush3.bf16.msra.mxu1 %v4331_v18 }
 0x4b7   : > { %1867 = vmatprep.subr.bf16.mxu0 %v4337_v19  ;;  %3036 = vmatprep.subr.bf16.mxu1 %v3636_v9 }
 0x4b8   : > { %1897 = vmatprep.mubr.bf16.mxu0 %v3635_v8  ;;  %3050 = vmatprep.mubr.msk.bf16.mxu1 %vm3637_vm0, %v3636_v9 }
 0x4ba   : > { %1868 = vmatpush1.bf16.msra.mxu0 %v4347_v20  ;;  %3037 = vmatpush3.bf16.msra.mxu1 %v4353_v21 }
 0x4bb   : > { %1869 = vmatprep.subr.bf16.mxu0 %v4359_v22  ;;  %3038 = vmatprep.subr.bf16.mxu1 %v3636_v9 }
 0x4be   : > { %1870 = vmatpush1.bf16.msra.mxu0 %v4366_v23  ;;  %3039 = vmatpush3.bf16.msra.mxu1 %v4372_v24 }
 0x4bf   : > { %1871 = vmatprep.subr.bf16.mxu0 %v4378_v25  ;;  %3040 = vmatprep.subr.bf16.mxu1 %v3636_v9 }
 0x4c2   : > { %1872 = vmatpush1.bf16.msra.mxu0 %v4385_v26  ;;  %3041 = vmatpush3.bf16.msra.mxu1 %v4391_v27 }
 0x4c3   : > { %1873 = vmatprep.subr.bf16.mxu0 %v4397_v28  ;;  %3042 = vmatprep.subr.bf16.mxu1 %v3636_v9 }
 0x4c6   : > { %1874 = vmatpush1.bf16.msra.mxu0 %v4404_v29  ;;  %3043 = vmatpush3.bf16.msra.mxu1 %v4410_v30 }
 0x4c7   : > { %1875 = vmatprep.subr.bf16.mxu0 %v4416_v31  ;;  %3044 = vmatprep.subr.bf16.mxu1 %v3636_v9 }
 0x4ca   : > { %1876 = vmatpush1.bf16.msra.mxu0 %v4423_v32  ;;  %3045 = vmatpush3.bf16.msra.mxu1 %v4429_v33 }
 0x4cb   : > { %1877 = vmatprep.subr.bf16.mxu0 %v4435_v34  ;;  %3046 = vmatprep.subr.bf16.mxu1 %v3636_v9 }
 0x4ce   : > { %1878 = vmatpush1.bf16.msra.mxu0 %v4442_v35  ;;  %3047 = vmatpush3.bf16.msra.mxu1 %v4448_v36 }
 0x4cf   : > { %1879 = vmatprep.subr.bf16.mxu0 %v4454_v37  ;;  %3048 = vmatprep.subr.bf16.mxu1 %v3636_v9 }
 0x4d2   : > { %1880 = vmatpush1.bf16.msra.mxu0 %v4461_v41  ;;  %3049 = vmatpush3.bf16.msra.mxu1 %v4467_v42 }
 0x4d3   : > { %2008 = vmatprep.subr.bf16.mxu0 %v4273_v11  ;;  %3054 = vmatprep.subr.bf16.mxu1 %v3636_v9 }
 0x580   : > { %v1671_v61 = vpop.f32.mrb[16].mxu0  ;;  %v1714_v43 = vpop.f32.mrb[44].mxu1 }
 0x581   : > { %v3150_v45 = vadd.f32 %v1671_v61, %v4045_v48  ;;  %v1673_v54 = vpop.f32.mrb[17].mxu0  ;;  %v3026_v10 = vpop.f32.mrb[45].mxu1 }
 0x582   : > { %v3151_v53 = vadd.f32 %v1673_v54, %v4047_v49  ;;  %v1675_v56 = vpop.f32.mrb[18].mxu0  ;;  %v1717_v58 = vpop.f32.mrb[46].mxu1 }
 0x583   : > { %v1723_v4 = vadd.f32 %v3150_v45, %v4052_v50  ;;  %v3152_v59 = vadd.f32 %v1675_v56, %v4045_v48  ;;  %v1677_v13 = vpop.f32.mrb[19].mxu0  ;;  %v3027_v60 = vpop.f32.mrb[47].mxu1  ;;  %v1753_v45 = vadd.f32 %v4070_v46, %v1714_v43  ;;  %v1754_v56 = vadd.f32 %v4070_v46, %v1717_v58 }
 0x584   : > { %v3153_v6 = vadd.f32 %v1677_v13, %v4047_v49  ;;  %v1739_v47 = vadd.f32 %v3151_v53, %v4060_v57 }
 0x585   : > { %v2754_v40 = vmul.f32 -1.442695, %v1723_v4  ;;  %v1724_v62 = vadd.f32 %v3152_v59, %v4052_v50  ;;  %v1633_v59 = vadd.f32 %v4317_v14, %v4072_v52 }
 0x586   : > { %v1740_v0 = vadd.f32 %v3153_v6, %v4060_v57  ;;  %v2756_v51 = vmul.f32 -1.442695, %v1739_v47  ;;  %v1630_v57 = vadd.f32 %v4315_v3, %v4072_v52 }
 0x587   : > { %3391 = vpow2.f32 %v2754_v40  ;;  %v2755_v63 = vmul.f32 -1.442695, %v1724_v62 }
 0x588   : > { %v2757_v2 = vmul.f32 -1.442695, %v1740_v0 }
 0x589   : > { %3393 = vpow2.f32 %v2755_v63 }
 0x58a   : > { %3395 = vpow2.f32 %v2756_v51 }
 0x58b   : > { %3397 = vpow2.f32 %v2757_v2 }
 0x591   : > { %v3392_v5 = vpop.eup %3391 }
 0x592   : > { %v1731_v39 = vadd.f32 1.0, %v3392_v5 }
 0x593   : > { %v3394_v12 = vpop.eup %3393 }
 0x594   : > { %3399 = vrcp.f32 %v1731_v39  ;;  %v1732_v15 = vadd.f32 1.0, %v3394_v12  ;;  %v3396_v16 = vpop.eup %3395 }
 0x595   : > { %v3398_v61 = vpop.eup %3397  ;;  %v1747_v50 = vadd.f32 1.0, %v3396_v16 }
 0x596   : > { %3401 = vrcp.f32 %v1732_v15  ;;  %v1748_v54 = vadd.f32 1.0, %v3398_v61  ;;  %v3301_v15 = vld [vmem:[%s3812_s15 + $0x30] sm:$0xff]  }
 0x597   : > { %3403 = vrcp.f32 %v1747_v50 }
 0x598   : > { %3405 = vrcp.f32 %v1748_v54 }
 0x59e   : > { %v3400_v10 = vpop.eup %3399 }
 0x59f   : > { %v1755_v53 = vmul.f32 %v3400_v10, %v1753_v45 }
 0x5a0   : > { %v3402_v4 = vpop.eup %3401 }
 0x5a1   : > { %v1757_v13 = vadd.f32 %v1755_v53, %v1630_v57  ;;  %v1756_v60 = vmul.f32 %v3402_v4, %v1754_v56  ;;  %v3404_v43 = vpop.eup %3403  ;;  %v4548_v56 = vld [vmem:[%s4737_s4] ss:$0 sm:$0xff] }
 0x5a2   : > { %v3406_v40 = vpop.eup %3405  ;;  %v1761_v62 = vsub.f32 1.0, %v3404_v43  ;;  %v1765_v0 = vmul.f32 %v3404_v43, %v4293_v44  ;;  %v4501_v44 = vpop.f32.mrb[48].mxu1 }
 0x5a3   : > { %3407 = vtanh.f32 %v1757_v13  ;;  %v1758_v6 = vadd.f32 %v1756_v60, %v1633_v59  ;;  %v1762_v63 = vsub.f32 1.0, %v3406_v40  ;;  %v1766_v58 = vmul.f32 %v3406_v40, %v4295_v55  ;;  %v3032_v55 = vpop.f32.mrb[49].mxu1  ;;  %v4557_v40 = vld [vmem:[%s4737_s4 + $0x1] ss:$0 sm:$0xff] }
 0x5a4   : > { %v4503_v39 = vpop.f32.mrb[50].mxu1 }
 0x5a5   : > { %3409 = vtanh.f32 %v1758_v6  ;;  %v3033_v12 = vpop.f32.mrb[51].mxu1 }
 0x5ad   : > { %v3408_v47 = vpop.eup %3407 }
 0x5ae   : > { %v1763_v3 = vmul.f32 %v3408_v47, %v1761_v62 }
 0x5af   : > { %v3410_v51 = vpop.eup %3409 }
 0x5b0   : > { %v1764_v46 = vmul.f32 %v3410_v51, %v1762_v63  ;;  %v4488_v14 = vadd.f32 %v1765_v0, %v1763_v3 }
 0x5b2   : > { %v4490_v2 = vadd.f32 %v1766_v58, %v1764_v46 }
 0x5b4   : > { %v1864_v5 = vpack.c.bf16 %v4490_v2, %v4488_v14 }
 0x5b6   : > { %1898 = vmatmul.mubr.bf16.vlgmr.msra.gmra.mrb[20].mxu0 %v1864_v5  ;;  %3051 = vmatmul.mubr.bf16.vlgmr.msra.gmra.mrb[52].mxu1 %v1864_v5 }
 0x5b7   : > { %2009 = vmatpush1.bf16.msra.mxu0 %v4299_v7  ;;  %3055 = vmatpush3.bf16.msra.mxu1 %v4302_v38 }
 0x5b8   : > { %2040 = vmatprep.mubr.bf16.mxu0 %v3635_v8  ;;  %3056 = vmatprep.mubr.msk.bf16.mxu1 %vm3637_vm0, %v3636_v9 }
 0x5b9   : > { %2093 = vmatprep.subr.bf16.mxu0 %v4311_v1  ;;  %3060 = vmatprep.subr.bf16.mxu1 %v3636_v9 }
 0x5be   : > { %2770 = vmatmul.mubr.msk.bf16.vlgmr.msra.gmra.mrb[24].mxu0 %vm491_vm1, %v3301_v15  ;;  %3057 = vmatmul.mubr.msk.bf16.vlgmr.msra.gmra.mrb[56].mxu1 %vm491_vm1, %v3301_v15 }
 0x5bf   : > { %2094 = vmatpush1.bf16.msra.mxu0 %v4325_v17  ;;  %3061 = vmatpush3.bf16.msra.mxu1 %v4331_v18 }
 0x5c0   : > { %2095 = vmatprep.subr.bf16.mxu0 %v4337_v19  ;;  %3062 = vmatprep.subr.bf16.mxu1 %v3636_v9 }
 0x5c1   : > { %2125 = vmatprep.mubr.bf16.mxu0 %v3635_v8  ;;  %3076 = vmatprep.mubr.msk.bf16.mxu1 %vm3637_vm0, %v3636_v9 }
 0x5c3   : > { %2096 = vmatpush1.bf16.msra.mxu0 %v4347_v20  ;;  %3063 = vmatpush3.bf16.msra.mxu1 %v4353_v21 }
 0x5c4   : > { %2097 = vmatprep.subr.bf16.mxu0 %v4359_v22  ;;  %3064 = vmatprep.subr.bf16.mxu1 %v3636_v9 }
 0x5c7   : > { %2098 = vmatpush1.bf16.msra.mxu0 %v4366_v23  ;;  %3065 = vmatpush3.bf16.msra.mxu1 %v4372_v24 }
 0x5c8   : > { %2099 = vmatprep.subr.bf16.mxu0 %v4378_v25  ;;  %3066 = vmatprep.subr.bf16.mxu1 %v3636_v9 }
 0x5cb   : > { %2100 = vmatpush1.bf16.msra.mxu0 %v4385_v26  ;;  %3067 = vmatpush3.bf16.msra.mxu1 %v4391_v27 }
 0x5cc   : > { %2101 = vmatprep.subr.bf16.mxu0 %v4397_v28  ;;  %3068 = vmatprep.subr.bf16.mxu1 %v3636_v9 }
 0x5cf   : > { %2102 = vmatpush1.bf16.msra.mxu0 %v4404_v29  ;;  %3069 = vmatpush3.bf16.msra.mxu1 %v4410_v30 }
 0x5d0   : > { %2103 = vmatprep.subr.bf16.mxu0 %v4416_v31  ;;  %3070 = vmatprep.subr.bf16.mxu1 %v3636_v9 }
 0x5d3   : > { %2104 = vmatpush1.bf16.msra.mxu0 %v4423_v32  ;;  %3071 = vmatpush3.bf16.msra.mxu1 %v4429_v33 }
 0x5d4   : > { %2105 = vmatprep.subr.bf16.mxu0 %v4435_v34  ;;  %3072 = vmatprep.subr.bf16.mxu1 %v3636_v9 }
 0x5d7   : > { %2106 = vmatpush1.bf16.msra.mxu0 %v4442_v35  ;;  %3073 = vmatpush3.bf16.msra.mxu1 %v4448_v36 }
 0x5d8   : > { %2107 = vmatprep.subr.bf16.mxu0 %v4454_v37  ;;  %3074 = vmatprep.subr.bf16.mxu1 %v3636_v9 }
 0x5db   : > { %2108 = vmatpush1.bf16.msra.mxu0 %v4461_v41  ;;  %3075 = vmatpush3.bf16.msra.mxu1 %v4467_v42 }
 0x5dc   : > { %2236 = vmatprep.subr.bf16.mxu0 %v4273_v11  ;;  %3080 = vmatprep.subr.bf16.mxu1 %v3636_v9 }
 0x689   : > { %v1899_v16 = vpop.f32.mrb[20].mxu0  ;;  %v1942_v61 = vpop.f32.mrb[52].mxu1 }
 0x68a   : > { %v3154_v50 = vadd.f32 %v1899_v16, %v4045_v48  ;;  %v1901_v45 = vpop.f32.mrb[21].mxu0  ;;  %v3052_v54 = vpop.f32.mrb[53].mxu1  ;;  %v4564_v16 = vld [vmem:[%s4737_s4 + $0x2] ss:$0 sm:$0xff] }
 0x68b   : > { %v3155_v10 = vadd.f32 %v1901_v45, %v4047_v49  ;;  %v1903_v57 = vpop.f32.mrb[22].mxu0  ;;  %v1945_v53 = vpop.f32.mrb[54].mxu1 }
 0x68c   : > { %v1951_v4 = vadd.f32 %v4548_v56, %v3154_v50  ;;  %v3156_v11 = vadd.f32 %v1903_v57, %v4045_v48  ;;  %v1905_v59 = vpop.f32.mrb[23].mxu0  ;;  %v3053_v13 = vpop.f32.mrb[55].mxu1  ;;  %v1981_v50 = vadd.f32 %v4564_v16, %v1942_v61 }
 0x68d   : > { %v3157_v60 = vadd.f32 %v1905_v59, %v4047_v49  ;;  %v1967_v62 = vadd.f32 %v4557_v40, %v3155_v10  ;;  %v1858_v10 = vadd.f32 %v4501_v44, %v4072_v52  ;;  %v1861_v59 = vadd.f32 %v4503_v39, %v4072_v52 }
 0x68e   : > { %v2763_v6 = vmul.f32 -1.442695, %v1951_v4  ;;  %v1952_v43 = vadd.f32 %v4548_v56, %v3156_v11  ;;  %v1982_v4 = vadd.f32 %v4564_v16, %v1945_v53 }
 0x68f   : > { %v1968_v63 = vadd.f32 %v4557_v40, %v3157_v60  ;;  %v2765_v3 = vmul.f32 -1.442695, %v1967_v62 }
 0x690   : > { %3411 = vpow2.f32 %v2763_v6  ;;  %v2764_v47 = vmul.f32 -1.442695, %v1952_v43 }
 0x691   : > { %v2766_v0 = vmul.f32 -1.442695, %v1968_v63 }
 0x692   : > { %3413 = vpow2.f32 %v2764_v47 }
 0x693   : > { %3415 = vpow2.f32 %v2765_v3 }
 0x694   : > { %3417 = vpow2.f32 %v2766_v0 }
 0x69a   : > { %v3412_v51 = vpop.eup %3411 }
 0x69b   : > { %v1959_v46 = vadd.f32 1.0, %v3412_v51 }
 0x69c   : > { %v3414_v58 = vpop.eup %3413 }
 0x69d   : > { %3419 = vrcp.f32 %v1959_v46  ;;  %v1960_v5 = vadd.f32 1.0, %v3414_v58  ;;  %v3416_v55 = vpop.eup %3415 }
 0x69e   : > { %v3418_v12 = vpop.eup %3417  ;;  %v1975_v15 = vadd.f32 1.0, %v3416_v55 }
 0x69f   : > { %3421 = vrcp.f32 %v1960_v5  ;;  %v1976_v45 = vadd.f32 1.0, %v3418_v12  ;;  %v3302_v12 = vld [vmem:[%s3812_s15 + $0x38] sm:$0xff]   ;;  %s2684_s15 = sshll.u32 %s3809_s11, 4 }
 0x6a0   : > { %3423 = vrcp.f32 %v1975_v15  ;;  %s408_s14 = scalar_lea.vmem [#allocation8], %s2684_s15 }
 0x6a1   : > { %3425 = vrcp.f32 %v1976_v45  ;;  %s2582_s16 = sshll.u32 %s408_s14, 4  ;;  %s4684_s16 = int_to_ptr.vmem [resolvable:$true] %s2582_s16 }
 0x6a2   : > { %s3557_s28 = scalar_lea.vmem %s4684_s16, 256  ;;  %p3564_p8 = scmp.lt.s32.totalorder %s4684_s16, %s3562_s23 }
 0x6a3   : > { %p3558_p12 = scmp.ne.s32.totalorder %s4684_s16, %s3557_s28  ;;  %p3565_p9 = scmp.lt.s32.totalorder %s3563_s29, %s3557_s28 }
 0x6a5   : > { %p3559_p4 = pnand %p3558_p12, %p4759_p3  ;;  %p3566_p13 = por %p3565_p9, %p3564_p8 }
 0x6a7   : > { %v3420_v54 = vpop.eup %3419  ;;  %p3560_p7 = pneg %p3559_p4 }
 0x6a8   : > { %v1983_v57 = vmul.f32 %v3420_v54, %v1981_v50 }
 0x6a9   : > { %v3422_v11 = vpop.eup %3421  ;;  %p3567_p2 = pnand %p3566_p13, %p3560_p7 }
 0x6aa   : > { %v1985_v13 = vadd.f32 %v1983_v57, %v1858_v10  ;;  %v1984_v60 = vmul.f32 %v3422_v11, %v1982_v4  ;;  %v3424_v61 = vpop.eup %3423 }
 0x6ab   : > { %v3426_v43 = vpop.eup %3425  ;;  %v1989_v62 = vsub.f32 1.0, %v3424_v61  ;;  %v1993_v3 = vmul.f32 %v3424_v61, %v4488_v14  ;;  %v4587_v14 = vpop.f32.mrb[56].mxu1 }
 0x6ac   : > { %3427 = vtanh.f32 %v1985_v13  ;;  %v1986_v6 = vadd.f32 %v1984_v60, %v1861_v59  ;;  %v1990_v63 = vsub.f32 1.0, %v3426_v43  ;;  %v1994_v51 = vmul.f32 %v3426_v43, %v4490_v2  ;;  %v3058_v2 = vpop.f32.mrb[57].mxu1 }
 0x6ad   : > { %v4589_v5 = vpop.f32.mrb[58].mxu1  ;;  %v2086_v54 = vadd.f32 %v4587_v14, %v4072_v52 }
 0x6ae   : > { %3429 = vtanh.f32 %v1986_v6  ;;  %v3059_v55 = vpop.f32.mrb[59].mxu1  ;;  %v2089_v11 = vadd.f32 %v4589_v5, %v4072_v52 }
 0x6b6   : > { %v3428_v47 = vpop.eup %3427 }
 0x6b7   : > { %v1991_v44 = vmul.f32 %v3428_v47, %v1989_v62 }
 0x6b8   : > { %v3430_v0 = vpop.eup %3429 }
 0x6b9   : > { %v1992_v53 = vmul.f32 %v3430_v0, %v1990_v63  ;;  %v4574_v39 = vadd.f32 %v1993_v3, %v1991_v44 }
 0x6bb   : > { %v4576_v46 = vadd.f32 %v1994_v51, %v1992_v53 }
 0x6bd   : > { %v2092_v58 = vpack.c.bf16 %v4576_v46, %v4574_v39 }
 0x6bf   : > { %2126 = vmatmul.mubr.bf16.vlgmr.msra.gmra.mrb[24].mxu0 %v2092_v58  ;;  %3077 = vmatmul.mubr.bf16.vlgmr.msra.gmra.mrb[60].mxu1 %v2092_v58 }
 0x6c0   : > { %2237 = vmatpush1.bf16.msra.mxu0 %v4299_v7  ;;  %3081 = vmatpush3.bf16.msra.mxu1 %v4302_v38 }
 0x6c1   : > { %2268 = vmatprep.mubr.bf16.mxu0 %v3635_v8  ;;  %3082 = vmatprep.mubr.msk.bf16.mxu1 %vm3637_vm0, %v3636_v9 }
 0x6c2   : > { %2321 = vmatprep.subr.bf16.mxu0 %v4311_v1  ;;  %3086 = vmatprep.subr.bf16.mxu1 %v3636_v9 }
 0x6c7   : > { %2779 = vmatmul.mubr.msk.bf16.vlgmr.msra.gmra.mrb[28].mxu0 %vm491_vm1, %v3302_v12  ;;  %3083 = vmatmul.mubr.msk.bf16.vlgmr.msra.gmra.mrb[64].mxu1 %vm491_vm1, %v3302_v12  ;;  %v3303_v12 = vld [vmem:[#allocation6] sm:$0xff]  }
 0x6c8   : > { %2322 = vmatpush1.bf16.msra.mxu0 %v4325_v17  ;;  %3087 = vmatpush3.bf16.msra.mxu1 %v4331_v18 }
 0x6c9   : > { %2323 = vmatprep.subr.bf16.mxu0 %v4337_v19  ;;  %3088 = vmatprep.subr.bf16.mxu1 %v3636_v9 }
 0x6ca   : > { %2353 = vmatprep.mubr.bf16.mxu0 %v3635_v8  ;;  %3102 = vmatprep.mubr.msk.bf16.mxu1 %vm3637_vm0, %v3636_v9 }
 0x6cc   : > { %2324 = vmatpush1.bf16.msra.mxu0 %v4347_v20  ;;  %3089 = vmatpush3.bf16.msra.mxu1 %v4353_v21 }
 0x6cd   : > { %2325 = vmatprep.subr.bf16.mxu0 %v4359_v22  ;;  %3090 = vmatprep.subr.bf16.mxu1 %v3636_v9 }
 0x6d0   : > { %2326 = vmatpush1.bf16.msra.mxu0 %v4366_v23  ;;  %3091 = vmatpush3.bf16.msra.mxu1 %v4372_v24 }
 0x6d1   : > { %2327 = vmatprep.subr.bf16.mxu0 %v4378_v25  ;;  %3092 = vmatprep.subr.bf16.mxu1 %v3636_v9 }
 0x6d4   : > { %2328 = vmatpush1.bf16.msra.mxu0 %v4385_v26  ;;  %3093 = vmatpush3.bf16.msra.mxu1 %v4391_v27 }
 0x6d5   : > { %2329 = vmatprep.subr.bf16.mxu0 %v4397_v28  ;;  %3094 = vmatprep.subr.bf16.mxu1 %v3636_v9 }
 0x6d8   : > { %2330 = vmatpush1.bf16.msra.mxu0 %v4404_v29  ;;  %3095 = vmatpush3.bf16.msra.mxu1 %v4410_v30 }
 0x6d9   : > { %2331 = vmatprep.subr.bf16.mxu0 %v4416_v31  ;;  %3096 = vmatprep.subr.bf16.mxu1 %v3636_v9 }
 0x6dc   : > { %2332 = vmatpush1.bf16.msra.mxu0 %v4423_v32  ;;  %3097 = vmatpush3.bf16.msra.mxu1 %v4429_v33 }
 0x6dd   : > { %2333 = vmatprep.subr.bf16.mxu0 %v4435_v34  ;;  %3098 = vmatprep.subr.bf16.mxu1 %v3636_v9 }
 0x6e0   : > { %2334 = vmatpush1.bf16.msra.mxu0 %v4442_v35  ;;  %3099 = vmatpush3.bf16.msra.mxu1 %v4448_v36 }
 0x6e1   : > { %2335 = vmatprep.subr.bf16.mxu0 %v4454_v37  ;;  %3100 = vmatprep.subr.bf16.mxu1 %v3636_v9 }
 0x6e4   : > { %2336 = vmatpush1.bf16.msra.mxu0 %v4461_v41  ;;  %3101 = vmatpush3.bf16.msra.mxu1 %v4467_v42 }
 0x6e5   : > { %3106 = vmatprep.subr.bf16.mxu0 %v3636_v9 }
 0x792   : > { %v2127_v8 = vpop.f32.mrb[24].mxu0  ;;  %v2170_v7 = vpop.f32.mrb[60].mxu1 }
 0x793   : > { %v3158_v38 = vadd.f32 %v2127_v8, %v4045_v48  ;;  %v2129_v1 = vpop.f32.mrb[25].mxu0  ;;  %v3078_v17 = vpop.f32.mrb[61].mxu1  ;;  %v2209_v15 = vadd.f32 %v4564_v16, %v2170_v7  ;;  %v3305_v8 = vld [vmem:[#allocation6 + $0x10] sm:$0xff]   ;;  %v3306_v7 = vld [vmem:[#allocation6 + $0x18] sm:$0xff]  }
 0x794   : > { %v3159_v18 = vadd.f32 %v2129_v1, %v4047_v49  ;;  %v2131_v19 = vpop.f32.mrb[26].mxu0  ;;  %v2173_v20 = vpop.f32.mrb[62].mxu1  ;;  %v3308_v1 = vld [vmem:[#allocation6 + $0x28] sm:$0xff]   ;;  %v3309_v17 = vld [vmem:[#allocation6 + $0x30] sm:$0xff]  }
 0x795   : > { %v2179_v21 = vadd.f32 %v4548_v56, %v3158_v38  ;;  %v3160_v22 = vadd.f32 %v2131_v19, %v4045_v48  ;;  %v2133_v23 = vpop.f32.mrb[27].mxu0  ;;  %v3079_v24 = vpop.f32.mrb[63].mxu1  ;;  %v2210_v57 = vadd.f32 %v4564_v16, %v2173_v20  ;;  %v3307_v38 = vld [vmem:[#allocation6 + $0x20] sm:$0xff]  }
 0x796   : > { %v3161_v25 = vadd.f32 %v2133_v23, %v4047_v49  ;;  %v2195_v28 = vadd.f32 %v4557_v40, %v3159_v18  ;;  %v3310_v18 = vld [vmem:[#allocation6 + $0x38] sm:$0xff]  }
 0x797   : > { %v2772_v26 = vmul.f32 -1.442695, %v2179_v21  ;;  %v2180_v27 = vadd.f32 %v4548_v56, %v3160_v22 }
 0x798   : > { %v2196_v30 = vadd.f32 %v4557_v40, %v3161_v25  ;;  %v2774_v31 = vmul.f32 -1.442695, %v2195_v28 }
 0x799   : > { %3431 = vpow2.f32 %v2772_v26  ;;  %v2773_v29 = vmul.f32 -1.442695, %v2180_v27 }
 0x79a   : > { %v2775_v32 = vmul.f32 -1.442695, %v2196_v30  ;;  %v4652_v2 = vpop.f32.mrb[64].mxu1 }
 0x79b   : > { %3433 = vpow2.f32 %v2773_v29  ;;  %v3084_v5 = vpop.f32.mrb[65].mxu1 }
 0x79c   : > { %3435 = vpow2.f32 %v2774_v31  ;;  %v2785_v5 = vld [vmem:[%s4739_s6] ss:$0 sm:$0xff] }
 0x79d   : > { %3437 = vpow2.f32 %v2775_v32 }
 0x7a3   : > { %v3432_v33 = vpop.eup %3431 }
 0x7a4   : > { %v2187_v34 = vadd.f32 1.0, %v3432_v33 }
 0x7a5   : > { %v3434_v35 = vpop.eup %3433 }
 0x7a6   : > { %3439 = vrcp.f32 %v2187_v34  ;;  %v2188_v36 = vadd.f32 1.0, %v3434_v35  ;;  %v3436_v37 = vpop.eup %3435 }
 0x7a7   : > { %v3438_v41 = vpop.eup %3437  ;;  %v2203_v42 = vadd.f32 1.0, %v3436_v37 }
 0x7a8   : > { %3441 = vrcp.f32 %v2188_v36  ;;  %v2204_v50 = vadd.f32 1.0, %v3438_v41 }
 0x7a9   : > { %3443 = vrcp.f32 %v2203_v42 }
 0x7aa   : > { %3445 = vrcp.f32 %v2204_v50 }
 0x7b0   : > { %v3440_v45 = vpop.eup %3439 }
 0x7b1   : > { %v2211_v10 = vmul.f32 %v3440_v45, %v2209_v15 }
 0x7b2   : > { %v3442_v4 = vpop.eup %3441 }
 0x7b3   : > { %v2213_v59 = vadd.f32 %v2211_v10, %v2086_v54  ;;  %v2212_v13 = vmul.f32 %v3442_v4, %v2210_v57  ;;  %v3444_v6 = vpop.eup %3443 }
 0x7b4   : > { %v3446_v61 = vpop.eup %3445  ;;  %v2217_v43 = vsub.f32 1.0, %v3444_v6  ;;  %v2221_v44 = vmul.f32 %v3444_v6, %v4574_v39  ;;  %v4654_v39 = vpop.f32.mrb[66].mxu1 }
 0x7b5   : > { %3447 = vtanh.f32 %v2213_v59  ;;  %v2214_v60 = vadd.f32 %v2212_v13, %v2089_v11  ;;  %v2218_v47 = vsub.f32 1.0, %v3446_v61  ;;  %v2222_v53 = vmul.f32 %v3446_v61, %v4576_v46  ;;  %v3085_v55 = vpop.f32.mrb[67].mxu1  ;;  %v3304_v46 = vld [vmem:[#allocation6 + $0x8] sm:$0xff]  }
 0x7b6   : > { %v2317_v59 = vadd.f32 %v4654_v39, %v4072_v52 }
 0x7b7   : > { %3449 = vtanh.f32 %v2214_v60 }
 0x7bf   : > { %v3448_v62 = vpop.eup %3447 }
 0x7c0   : > { %v2219_v63 = vmul.f32 %v3448_v62, %v2217_v43 }
 0x7c1   : > { %v3450_v3 = vpop.eup %3449 }
 0x7c2   : > { %v2220_v0 = vmul.f32 %v3450_v3, %v2218_v47  ;;  %v4644_v51 = vadd.f32 %v2221_v44, %v2219_v63 }
 0x7c4   : > { %v4646_v58 = vadd.f32 %v2222_v53, %v2220_v0 }
 0x7c6   : > { %v2320_v14 = vpack.c.bf16 %v4646_v58, %v4644_v51 }
 0x7c8   : > { %2354 = vmatmul.mubr.bf16.vlgmr.msra.gmra.mrb[28].mxu0 %v2320_v14  ;;  %3103 = vmatmul.mubr.bf16.vlgmr.msra.gmra.mrb[68].mxu1 %v2320_v14 }
 0x7c9   : > { %3122 = vmatprep.mubr.msk.bf16.mxu0 %vm3637_vm0, %v3636_v9  ;;  %3107 = vmatpush3.bf16.msra.mxu0 %v3303_v12 }
 0x7ca   : > { %3108 = vmatprep.subr.bf16.mxu0 %v3636_v9 }
 0x7cd   : > { %3109 = vmatpush3.bf16.msra.mxu0 %v3304_v46 }
 0x7ce   : > { %3110 = vmatprep.subr.bf16.mxu0 %v3636_v9 }
 0x7d1   : > { %3111 = vmatpush3.bf16.msra.mxu0 %v3305_v8 }
 0x7d2   : > { %3112 = vmatprep.subr.bf16.mxu0 %v3636_v9 }
 0x7d5   : > { %3113 = vmatpush3.bf16.msra.mxu0 %v3306_v7 }
 0x7d6   : > { %3114 = vmatprep.subr.bf16.mxu0 %v3636_v9 }
 0x7d9   : > { %3115 = vmatpush3.bf16.msra.mxu0 %v3307_v38 }
 0x7da   : > { %3116 = vmatprep.subr.bf16.mxu0 %v3636_v9 }
 0x7dd   : > { %3117 = vmatpush3.bf16.msra.mxu0 %v3308_v1 }
 0x7de   : > { %3118 = vmatprep.subr.bf16.mxu0 %v3636_v9 }
 0x7e1   : > { %3119 = vmatpush3.bf16.msra.mxu0 %v3309_v17 }
 0x7e2   : > { %3120 = vmatprep.subr.bf16.mxu0 %v3636_v9 }
 0x7e5   : > { %3121 = vmatpush3.bf16.msra.mxu0 %v3310_v18 }
 0x89b   : > { %v2355_v19 = vpop.f32.mrb[28].mxu0  ;;  %v2398_v20 = vpop.f32.mrb[68].mxu1 }
 0x89c   : > { %v3162_v21 = vadd.f32 %v2355_v19, %v4045_v48  ;;  %v2357_v22 = vpop.f32.mrb[29].mxu0  ;;  %v3104_v23 = vpop.f32.mrb[69].mxu1  ;;  %v2437_v45 = vadd.f32 %v4564_v16, %v2398_v20 }
 0x89d   : > { %v3163_v24 = vadd.f32 %v2357_v22, %v4047_v49  ;;  %v2359_v25 = vpop.f32.mrb[30].mxu0  ;;  %v2401_v26 = vpop.f32.mrb[70].mxu1 }
 0x89e   : > { %v2407_v27 = vadd.f32 %v4548_v56, %v3162_v21  ;;  %v3164_v28 = vadd.f32 %v2359_v25, %v4045_v48  ;;  %v2361_v29 = vpop.f32.mrb[31].mxu0  ;;  %v3105_v30 = vpop.f32.mrb[71].mxu1  ;;  %v2438_v4 = vadd.f32 %v4564_v16, %v2401_v26 }
 0x89f   : > { %v3165_v31 = vadd.f32 %v2361_v29, %v4047_v49  ;;  %v2423_v33 = vadd.f32 %v4557_v40, %v3163_v24 }
 0x8a0   : > { %v2781_v9 = vmul.f32 -1.442695, %v2407_v27  ;;  %v2408_v32 = vadd.f32 %v4548_v56, %v3164_v28 }
 0x8a1   : > { %v2424_v35 = vadd.f32 %v4557_v40, %v3165_v31  ;;  %v2783_v36 = vmul.f32 -1.442695, %v2423_v33  ;;  %v2314_v40 = vadd.f32 %v4652_v2, %v4072_v52 }
 0x8a2   : > { %3451 = vpow2.f32 %v2781_v9  ;;  %v2782_v34 = vmul.f32 -1.442695, %v2408_v32 }
 0x8a3   : > { %v2784_v37 = vmul.f32 -1.442695, %v2424_v35 }
 0x8a4   : > { %3453 = vpow2.f32 %v2782_v34 }
 0x8a5   : > { %3455 = vpow2.f32 %v2783_v36 }
 0x8a6   : > { %3457 = vpow2.f32 %v2784_v37 }
 0x8ac   : > { %v3452_v41 = vpop.eup %3451 }
 0x8ad   : > { %v2415_v48 = vadd.f32 1.0, %v3452_v41 }
 0x8ae   : > { %v3454_v42 = vpop.eup %3453 }
 0x8af   : > { %3459 = vrcp.f32 %v2415_v48  ;;  %v2416_v15 = vadd.f32 1.0, %v3454_v42  ;;  %v3456_v49 = vpop.eup %3455 }
 0x8b0   : > { %v3458_v50 = vpop.eup %3457  ;;  %v2431_v56 = vadd.f32 1.0, %v3456_v49 }
 0x8b1   : > { %3461 = vrcp.f32 %v2416_v15  ;;  %v2432_v54 = vadd.f32 1.0, %v3458_v50 }
 0x8b2   : > { %3463 = vrcp.f32 %v2431_v56 }
 0x8b3   : > { %3465 = vrcp.f32 %v2432_v54 }
 0x8b9   : > { %v3460_v10 = vpop.eup %3459 }
 0x8ba   : > { %v2439_v57 = vmul.f32 %v3460_v10, %v2437_v45 }
 0x8bb   : > { %v3462_v11 = vpop.eup %3461 }
 0x8bc   : > { %v2441_v13 = vadd.f32 %v2439_v57, %v2314_v40  ;;  %v2440_v60 = vmul.f32 %v3462_v11, %v2438_v4  ;;  %v3464_v61 = vpop.eup %3463 }
 0x8bd   : > { %v3466_v43 = vpop.eup %3465  ;;  %v2445_v62 = vsub.f32 1.0, %v3464_v61  ;;  %v2449_v16 = vmul.f32 %v3464_v61, %v4644_v51 }
 0x8be   : > { %3467 = vtanh.f32 %v2441_v13  ;;  %v2442_v6 = vadd.f32 %v2440_v60, %v2317_v59  ;;  %v2446_v63 = vsub.f32 1.0, %v3466_v43  ;;  %v2450_v52 = vmul.f32 %v3466_v43, %v4646_v58 }
 0x8c0   : > { %3469 = vtanh.f32 %v2442_v6 }
 0x8c8   : > { %v3468_v47 = vpop.eup %3467 }
 0x8c9   : > { %v2447_v44 = vmul.f32 %v3468_v47, %v2445_v62 }
 0x8ca   : > { %v3470_v3 = vpop.eup %3469 }
 0x8cb   : > { %v2448_v0 = vmul.f32 %v3470_v3, %v2446_v63  ;;  %v2451_v53 = vadd.f32 %v2449_v16, %v2447_v44 }
 0x8cd   : > { %v2452_v14 = vadd.f32 %v2450_v52, %v2448_v0 }
 0x8cf   : > { %v2453_v2 = vpack.c.bf16 %v2452_v14, %v2451_v53 }
 0x8d1   : > { %3123 = vmatmul.mubr.bf16.vlgmr.msra.gmra.mrb[32].mxu0 %v2453_v2 }
 0x9a4   : > { %v2559_v39 = vpop.f32.mrb[32].mxu0 }
 0x9a5   : > { %v2560_v51 = vadd.f32 %v2785_v5, %v2559_v39  ;;  %v3124_v58 = vpop.f32.mrb[33].mxu0 }
 0x9a6   : > { %v2562_v55 = vpop.f32.mrb[34].mxu0 }
 0x9a7   : > { %2566 = vst [vmem:[%s408_s14] sm:$0xff] %v2560_v51  ;;  %v2563_v12 = vadd.f32 %v2785_v5, %v2562_v55  ;;  %v3125_v46 = vpop.f32.mrb[35].mxu0 }
 0x9a9   : > { %2567 = vst [vmem:[%s408_s14 + $0x8] sm:$0xff] %v2563_v12 }
 0x9aa   : > { %3570 = shalt.err (!%p3567_p2)
}
 0x9ab   : > { %s3571_s8 = scalar_lea.hbm %s4689_s20, 256  ;;  %s3575_s19 = scalar_lea.hbm %s4740_s7, 512 }
 0x9ac   : > { %p3572_p0 = scmp.ne.s32.totalorder %s4689_s20, %s3571_s8  ;;  %p3576_p10 = scmp.lt.u32.totalorder %s4689_s20, %s4740_s7 }
 0x9ad   : > { %p3577_p11 = scmp.lt.u32.totalorder %s3575_s19, %s3571_s8  ;;  %p3579_p4 = scmp.lt.u32.totalorder %s3571_s8, %s4689_s20 }
 0x9ae   : > { %p3573_p5 = pnand %p3572_p0, %p4759_p3 }
 0x9af   : > { %p3578_p12 = por %p3577_p11, %p3576_p10 }
 0x9b0   : > { %p3574_p6 = pneg %p3573_p5 }
 0x9b1   : > { %p3580_p7 = por %p3579_p4, %p3578_p12 }
 0x9b3   : > { %p3581_p8 = pnand %p3580_p7, %p3574_p6 }
 0x9b5   : > { %3584 = shalt.err (!%p3581_p8)
}
 0x9b6   : > { %s3639_s30 = smov 128   ;;  %s3640_s10 = smov 8  }
 0x9b7   : > { %3198 = dma.vmem_to_hbm [thread:$0]  (%p4759_p3), %s4684_s16, 256, %s4689_s20, %s2569_s21, %s3639_s30, %s3639_s30, %s3640_s10  }
 0x9b8 PF: > { %s2597_s18 = sand.u32 1, %s3615_s24   ;;  %p4760_p9 = scmp.ne.s32.totalorder %s4750_s13, 0 }
 0x9b9   : > { %s2598_s28 = scalar_lea.sflag [#allocation5], %s2597_s18 }
 0x9ba   : > { %p3208_p13 = pnand %p2676_p1, %p4760_p9 }
 0x9bc   : > { %3610 = dma.done.wait (!%p3208_p13), %s2598_s28, 256  }
 0x9bd   : > { %3612 = vsyncadd (!%p3208_p13), %s2598_s28, 4294967040  ;;  %s4761_s27 = sld [smem:[#allocation12_spill]]  ;;  %s4762_s22 = sld [smem:[#allocation13_spill]] }
 0x9be   : > { %s4763_s24 = smov %s3619_s25  ;;  %s4764_s25 = smov %s3623_s26 }
 0x9c3   : > { %p19_p2 = scmp.ge.s32.totalorder %s4761_s27, 4   ;;  %s4765_s26 = smov %s4762_s22 }
 0x9c5   :  { %21 = sbr.rel (!%p19_p2) target bundleno = 5 (0x5), region = 145 }
 0x9cc   :  { %2603 = vsyncpa [#allocation4], 1 }
 0x9cd   :  { %2605 = vsyncpa [#allocation4 + $0x1], 1 }
 0x9ce   :  { %2606 = vsyncpa [#allocation7], 1 }
 0x9cf   :  { %2607 = vsyncpa [#allocation5], 1 }
 0x9d0   :  { %2609 = vsyncpa [#allocation5 + $0x1], 1 }

</bundles_post_ra>
